<compile_context>
chip_gen: v5e
topology: v5e:2x2
jax: 0.10.0
libtpu: 0.0.40
codegen_flags: <defaults>
</compile_context>

<pallas_src>
import functools

import numpy as np
import jax
import jax.numpy as jnp
from jax.experimental import pallas as pl
from jax.experimental.pallas import tpu as pltpu


# ----- deterministic DB4 synthesis taps (exactly as the torch __init__) -----
_DB4_LOW = np.array([0.48296, 0.83652, 0.22414, -0.12941], dtype=np.float32)
_DB4_HIGH = np.array([-0.12941, -0.22414, 0.83652, -0.48296], dtype=np.float32)
# subband k -> 4x4 kernel = outer(vertical, horizontal); identical per group:
#   k=0: (low, low)   k=1: (low, high)   k=2: (high, low)   k=3: (high, high)
_W4 = np.stack([
    np.outer(_DB4_LOW, _DB4_LOW),
    np.outer(_DB4_LOW, _DB4_HIGH),
    np.outer(_DB4_HIGH, _DB4_LOW),
    np.outer(_DB4_HIGH, _DB4_HIGH),
]).astype(np.float32)


def _local_band_matrix(filt, wt):
    """(wt+2, 2*wt) banded horizontal synthesis matrix for ONE column tile.

    Row i indexes the zero-padded input columns [tile_start-1, tile_start+wt+1);
    column x indexes cropped output columns [2*tile_start, 2*(tile_start+wt)).
    m[i, x] = filt[kw] with x = 2*i + kw - 3 (transposed-conv tap after the
    padding=1 crop).  The same matrix serves every tile; boundary tiles simply
    multiply zero halo columns.
    """
    m = np.zeros((wt + 2, 2 * wt), dtype=np.float32)
    for i in range(wt + 2):
        for kw in range(4):
            x = 2 * i + kw - 3
            if 0 <= x < 2 * wt:
                m[i, x] = filt[kw]
    return m


def _db4_uping_kernel(x0_ref, x1_ref, x2_ref, x3_ref, ml_ref, mh_ref, o_ref,
                      *, rows_per_image):
    """One (batch, group-block) tile.

    x*_ref : (CB*H, W)       subband planes k=0..3 of the group-block
    ml/mh  : (Wt+2, 2*Wt)    banded horizontal synthesis matrices (low / high)
    o_ref  : (CB*H, 4W)      [even output rows | odd output rows], each 2W wide
    """
    l0, l1, l2, l3 = (float(v) for v in _DB4_LOW)
    g0, g1, g2, g3 = (float(v) for v in _DB4_HIGH)

    a0 = x0_ref[...]
    a1 = x1_ref[...]
    a2 = x2_ref[...]
    a3 = x3_ref[...]

    n, w = a0.shape
    h = rows_per_image
    wt = ml_ref.shape[1] // 2
    n_tiles = w // wt

    # (n, 1) row masks for the in-image vertical halo: one mod+cmp per ROW,
    # broadcast across lanes (cheaper than a full (n, w) iota plane).
    row = jax.lax.broadcasted_iota(jnp.int32, (n, 1), 0)
    rmod = row % h
    has_prev = rmod != 0           # row j-1 exists inside the same image
    has_next = rmod != (h - 1)     # row j+1 exists inside the same image

    def prev_row(v):   # v[j-1, :], zero on the first row of every image
        return jnp.where(has_prev, jnp.roll(v, 1, axis=0), 0.0)

    def next_row(v):   # v[j+1, :], zero on the last row of every image
        return jnp.where(has_next, jnp.roll(v, -1, axis=0), 0.0)

    # ---- vertical (row) synthesis, split by output-row parity ---------------
    #   even output rows: taps (kh=1, row j) and (kh=3, row j-1)
    #   odd  output rows: taps (kh=2, row j) and (kh=0, row j+1)
    # Combine subbands first, shift the combination once (shift reuse).
    u0_lo = l1 * a0 + g1 * a2 + prev_row(l3 * a0 + g3 * a2)   # h-filter = low
    u0_hi = l1 * a1 + g1 * a3 + prev_row(l3 * a1 + g3 * a3)   # h-filter = high
    u1_lo = l2 * a0 + g2 * a2 + next_row(l0 * a0 + g0 * a2)
    u1_hi = l2 * a1 + g2 * a3 + next_row(l0 * a1 + g0 * a3)

    # One zero column of halo on each side so every column tile reuses the
    # same (wt+2, 2*wt) banded matrix (boundary tiles just see zeros).
    zcol = jnp.zeros((n, 1), jnp.float32)

    def pad_cols(v):
        return jnp.concatenate([zcol, v, zcol], axis=1)

    u0_lo = pad_cols(u0_lo)
    u0_hi = pad_cols(u0_hi)
    u1_lo = pad_cols(u1_lo)
    u1_hi = pad_cols(u1_hi)

    ml = ml_ref[...]
    mh = mh_ref[...]
    dot = functools.partial(jnp.dot,
                            precision=jax.lax.Precision.HIGHEST,
                            preferred_element_type=jnp.float32)

    # ---- horizontal (column) synthesis: band-tiled, lane-dense matmuls ------
    # Per tile: (n, Wt+2) x (Wt+2, 2Wt) -> disjoint 2Wt-wide output columns;
    # when W % 64 == 0 every store below is a 128-lane-aligned unmasked vst.
    for t in range(n_tiles):
        s = t * wt

        def band(v, s=s):
            return v[:, s:s + wt + 2]

        r0 = dot(band(u0_lo), ml) + dot(band(u0_hi), mh)   # even output rows
        r1 = dot(band(u1_lo), ml) + dot(band(u1_hi), mh)   # odd  output rows
        o_ref[:, 2 * s: 2 * s + 2 * wt] = r0
        o_ref[:, 2 * w + 2 * s: 2 * w + 2 * s + 2 * wt] = r1


# ------------------------------ tiling helpers -------------------------------
def _pick_col_tile(w, target=64):
    """Column-tile width for the banded horizontal matmul.

    Wt ~ 64 keeps the MXU work (with Precision.HIGHEST) under the HBM roofline
    on v5e / v6e / v7x while the (Wt+2, 2*Wt) matrices stay tiny in VMEM.
    Falls back to the dense (W, 2W) case for awkward W.
    """
    if w <= target:
        return w
    best = max(d for d in range(1, target + 1) if w % d == 0)
    return best if best >= 16 else w


def _vmem_block_estimate(cb, h, w, wt):
    """Per-grid-step VMEM footprint model (includes the banded matrices)."""
    blk = cb * h * w * 4                         # one f32 subband block
    mats = 2 * 2 * (wt + 2) * (2 * wt) * 4       # ml + mh, double-buffered
    return (2 * 4 * blk        # 4 double-buffered input slabs
            + 2 * 4 * blk      # double-buffered 4W-wide output block
            + 14 * blk         # live temporaries (a*, u*, pads, tile results)
            + mats)


def _vmem_budget_bytes():
    """Generation-aware VMEM budget + compiler limit (~0.7x / ~0.85x capacity)."""
    cap = 64 << 20   # conservative fallback = v7x per-TensorCore VMEM
    try:
        info = pltpu.get_tpu_info()
        cap = int(getattr(info, "vmem_capacity_bytes", cap)) or cap
    except Exception:
        pass
    budget = int(cap * 0.70)
    limit = int(min(cap * 0.85, budget * 1.20))
    return budget, limit


def _pick_group_block(c, h, w, wt, batch, budget_bytes):
    """Largest divisor of C whose block satisfies the sublane rule, fits the
    VMEM budget, and (for batch==1) still leaves >= 2 grid steps for v7x's
    two TensorCores."""
    divisors = [d for d in range(1, c + 1) if c % d == 0]
    valid = [d for d in divisors if (d * h) % 8 == 0]
    if not valid:
        raise ValueError(
            f"No group block satisfies (CB*H) % 8 == 0 for C={c}, H={h}; "
            "pad H to a multiple of 8 or pass group_block explicitly.")
    fitting = [d for d in valid if _vmem_block_estimate(d, h, w, wt) <= budget_bytes]
    if not fitting:                 # best effort: smallest legal block
        fitting = [min(valid)]
    if batch == 1:                  # keep >=2 parallel grid steps for v7x
        multi = [d for d in fitting if (c // d) >= 2]
        if multi:
            fitting = multi
    return max(fitting)


# --------------------------------- wrapper -----------------------------------
def db4_uping_forward(x, channel_in, *, group_block=None, col_tile=None):
    """Equivalent of DB4Uping.forward(x, rev=False)."""
    B, c4, H, W = x.shape
    C = channel_in
    if c4 != 4 * C:
        raise ValueError("input must have 4 * channel_in channels")
    x = x.astype(jnp.float32)

    Wt = _pick_col_tile(W) if col_tile is None else col_tile
    assert W % Wt == 0, "col_tile must divide W"

    budget, vmem_limit = _vmem_budget_bytes()
    CB = (_pick_group_block(C, H, W, Wt, B, budget)
          if group_block is None else group_block)
    assert C % CB == 0 and (CB * H) % 8 == 0
    nC = C // CB

    # Metadata-only reshape: merge channel and row dims so every kernel operand
    # is a plain 2-D (rows, W) tile.  Subband k of groups [c*CB, (c+1)*CB) is
    # the contiguous row slab starting at (k*C + c*CB)*H.
    x_rows = x.reshape(B, 4 * C * H, W)

    ml = jnp.asarray(_local_band_matrix(_DB4_LOW, Wt))
    mh = jnp.asarray(_local_band_matrix(_DB4_HIGH, Wt))

    def sub_spec(k):
        return pl.BlockSpec((None, CB * H, W),
                            lambda b, c, k=k: (b, k * nC + c, 0))

    kernel = functools.partial(_db4_uping_kernel, rows_per_image=H)

    cost = pl.CostEstimate(
        flops=int(16 * B * C * H * W * (Wt + 2) + 40 * B * C * H * W),
        transcendentals=0,
        bytes_accessed=int(32 * B * C * H * W),
    )

    out = pl.pallas_call(
        kernel,
        out_shape=jax.ShapeDtypeStruct((B, C * H, 4 * W), jnp.float32),
        grid=(B, nC),
        in_specs=[sub_spec(0), sub_spec(1), sub_spec(2), sub_spec(3),
                  pl.BlockSpec((Wt + 2, 2 * Wt), lambda b, c: (0, 0)),
                  pl.BlockSpec((Wt + 2, 2 * Wt), lambda b, c: (0, 0))],
        out_specs=pl.BlockSpec((None, CB * H, 4 * W), lambda b, c: (b, c, 0)),
        compiler_params=pltpu.CompilerParams(
            dimension_semantics=("parallel", "parallel"),
            vmem_limit_bytes=vmem_limit),
        cost_estimate=cost,
    )(x_rows, x_rows, x_rows, x_rows, ml, mh)

    # Free reshape: [B, C*H, 2*(2W)] -> [B, C, 2H, 2W]; the even/odd row
    # polyphases already sit at their final memory offsets.
    return out.reshape(B, C, 2 * H, 2 * W)


# ----- pure-numpy reference of F.conv_transpose2d(stride=2, padding=1, groups=C)
def _ref_forward_np(x, channel_in):
    x = np.asarray(x, dtype=np.float32)
    B, C4, H, W = x.shape
    C = channel_in
    xr = x.reshape(B, 4, C, H, W).transpose(0, 2, 1, 3, 4)  # [B, C, 4, H, W]
    full = np.zeros((B, C, 2 * H + 2, 2 * W + 2), dtype=np.float32)
    for k in range(4):
        for kh in range(4):
            for kw in range(4):
                full[:, :, kh:kh + 2 * H - 1:2, kw:kw + 2 * W - 1:2] += (
                    xr[:, :, k] * _W4[k, kh, kw]
                )
    return full[:, :, 1:-1, 1:-1]  # crop padding=1 -> [B, C, 2H, 2W]


if __name__ == "__main__":
    B, C, H, W = 2, 4, 16, 16   # channel_in = 4 -> x has 16 channels
    key = jax.random.PRNGKey(0)
    x = jax.random.normal(key, (B, 4 * C, H, W), dtype=jnp.float32)

    fwd = jax.jit(functools.partial(db4_uping_forward, channel_in=C))
    out = jax.block_until_ready(fwd(x))

    ref = _ref_forward_np(np.asarray(x), C)
    assert out.shape == (B, C, 2 * H, 2 * W), out.shape
    # Vertical pass is exact f32 on the VPU; the banded matmuls run with
    # Precision.HIGHEST, so the observed error is ~1e-6.
    np.testing.assert_allclose(np.asarray(out), ref, atol=1e-3, rtol=1e-3)

    print("KERNEL_OK")
</pallas_src>

<mosaic_0001>
module attributes {stable_mosaic.version = 11 : i64} {
  func.func @_db4_uping_kernel(%arg0: i32, %arg1: i32, %arg2: memref<1x64x16xf32, #tpu.memory_space<vmem>>, %arg3: memref<1x64x16xf32, #tpu.memory_space<vmem>>, %arg4: memref<1x64x16xf32, #tpu.memory_space<vmem>>, %arg5: memref<1x64x16xf32, #tpu.memory_space<vmem>>, %arg6: memref<18x32xf32, #tpu.memory_space<vmem>>, %arg7: memref<18x32xf32, #tpu.memory_space<vmem>>, %arg8: memref<1x64x64xf32, #tpu.memory_space<vmem>>) attributes {dimension_semantics = [#tpu.dimension_semantics<parallel>, #tpu.dimension_semantics<parallel>], iteration_bounds = array<i64: 2, 1>, scalar_prefetch = 0 : i64, scratch_operands = 0 : i64, tpu.core_type = #tpu.core_type<tc>, window_params = [{transform_indices = @transform_0, window_bounds = array<i64: 1, 64, 16>}, {transform_indices = @transform_1, window_bounds = array<i64: 1, 64, 16>}, {transform_indices = @transform_2, window_bounds = array<i64: 1, 64, 16>}, {transform_indices = @transform_3, window_bounds = array<i64: 1, 64, 16>}, {pipeline_mode = #tpu.pipeline_mode<synchronous>, transform_indices = @transform_4, window_bounds = array<i64: 18, 32>}, {pipeline_mode = #tpu.pipeline_mode<synchronous>, transform_indices = @transform_5, window_bounds = array<i64: 18, 32>}, {transform_indices = @transform_6, window_bounds = array<i64: 1, 64, 64>}]} {
    %c0 = arith.constant 0 : index
    %c0_0 = arith.constant 0 : index
    %c0_1 = arith.constant 0 : index
    %0 = vector.load %arg2[%c0, %c0_0, %c0_1] : memref<1x64x16xf32, #tpu.memory_space<vmem>>, vector<1x64x16xf32>
    %1 = vector.shape_cast %0 : vector<1x64x16xf32> to vector<64x16xf32>
    %c0_2 = arith.constant 0 : index
    %c0_3 = arith.constant 0 : index
    %c0_4 = arith.constant 0 : index
    %2 = vector.load %arg3[%c0_2, %c0_3, %c0_4] : memref<1x64x16xf32, #tpu.memory_space<vmem>>, vector<1x64x16xf32>
    %3 = vector.shape_cast %2 : vector<1x64x16xf32> to vector<64x16xf32>
    %c0_5 = arith.constant 0 : index
    %c0_6 = arith.constant 0 : index
    %c0_7 = arith.constant 0 : index
    %4 = vector.load %arg4[%c0_5, %c0_6, %c0_7] : memref<1x64x16xf32, #tpu.memory_space<vmem>>, vector<1x64x16xf32>
    %5 = vector.shape_cast %4 : vector<1x64x16xf32> to vector<64x16xf32>
    %c0_8 = arith.constant 0 : index
    %c0_9 = arith.constant 0 : index
    %c0_10 = arith.constant 0 : index
    %6 = vector.load %arg5[%c0_8, %c0_9, %c0_10] : memref<1x64x16xf32, #tpu.memory_space<vmem>>, vector<1x64x16xf32>
    %7 = vector.shape_cast %6 : vector<1x64x16xf32> to vector<64x16xf32>
    %8 = tpu.iota {dimensions = array<i32: 0>} : vector<64x1xi32>
    %c16_i32 = arith.constant 16 : i32
    %c0_i32 = arith.constant 0 : i32
    %9 = arith.cmpi eq, %c16_i32, %c0_i32 : i32
    %c1_i32 = arith.constant 1 : i32
    %10 = arith.select %9, %c1_i32, %c16_i32 : i32
    %11 = vector.broadcast %10 : i32 to vector<64x1xi32>
    %12 = arith.remsi %8, %11 : vector<64x1xi32>
    %c0_i32_11 = arith.constant 0 : i32
    %13 = vector.broadcast %c0_i32_11 : i32 to vector<64x1xi32>
    %14 = arith.cmpi ne, %12, %13 : vector<64x1xi32>
    %c0_i32_12 = arith.constant 0 : i32
    %15 = vector.broadcast %c0_i32_12 : i32 to vector<64x1xi32>
    %16 = arith.cmpi slt, %12, %15 : vector<64x1xi32>
    %c0_i32_13 = arith.constant 0 : i32
    %17 = arith.cmpi slt, %10, %c0_i32_13 : i32
    %18 = vector.broadcast %17 : i1 to vector<64x1xi1>
    %19 = vector.broadcast %18 : vector<64x1xi1> to vector<64x1xi1>
    %20 = arith.xori %16, %19 : vector<64x1xi1>
    %21 = arith.andi %20, %14 : vector<64x1xi1>
    %22 = vector.broadcast %10 : i32 to vector<64x1xi32>
    %23 = arith.addi %12, %22 : vector<64x1xi32>
    %24 = arith.select %21, %23, %12 : vector<64x1xi1>, vector<64x1xi32>
    %c0_i32_14 = arith.constant 0 : i32
    %25 = vector.broadcast %c0_i32_14 : i32 to vector<64x1xi32>
    %26 = arith.cmpi ne, %24, %25 : vector<64x1xi32>
    %c15_i32 = arith.constant 15 : i32
    %27 = vector.broadcast %c15_i32 : i32 to vector<64x1xi32>
    %28 = arith.cmpi ne, %24, %27 : vector<64x1xi32>
    %cst = arith.constant 8.365200e-01 : f32
    %29 = vector.broadcast %cst : f32 to vector<64x16xf32>
    %30 = arith.mulf %29, %1 : vector<64x16xf32>
    %cst_15 = arith.constant -2.241400e-01 : f32
    %31 = vector.broadcast %cst_15 : f32 to vector<64x16xf32>
    %32 = arith.mulf %31, %5 : vector<64x16xf32>
    %33 = arith.addf %30, %32 : vector<64x16xf32>
    %cst_16 = arith.constant -1.294100e-01 : f32
    %34 = vector.broadcast %cst_16 : f32 to vector<64x16xf32>
    %35 = arith.mulf %34, %1 : vector<64x16xf32>
    %cst_17 = arith.constant -4.829600e-01 : f32
    %36 = vector.broadcast %cst_17 : f32 to vector<64x16xf32>
    %37 = arith.mulf %36, %5 : vector<64x16xf32>
    %38 = arith.addf %35, %37 : vector<64x16xf32>
    %39 = vector.extract_strided_slice %38 {offsets = [63, 0], sizes = [1, 16], strides = [1, 1]} : vector<64x16xf32> to vector<1x16xf32>
    %40 = vector.extract_strided_slice %38 {offsets = [0, 0], sizes = [63, 16], strides = [1, 1]} : vector<64x16xf32> to vector<63x16xf32>
    %41 = tpu.concatenate %39, %40 in 0 : vector<1x16xf32>, vector<63x16xf32> -> vector<64x16xf32>
    %cst_18 = arith.constant 0.000000e+00 : f32
    %42 = vector.shape_cast %26 : vector<64x1xi1> to vector<64x1xi1>
    %43 = vector.broadcast %42 : vector<64x1xi1> to vector<64x16xi1>
    %44 = vector.broadcast %cst_18 : f32 to vector<64x16xf32>
    %45 = arith.select %43, %41, %44 : vector<64x16xi1>, vector<64x16xf32>
    %46 = arith.addf %33, %45 : vector<64x16xf32>
    %cst_19 = arith.constant 8.365200e-01 : f32
    %47 = vector.broadcast %cst_19 : f32 to vector<64x16xf32>
    %48 = arith.mulf %47, %3 : vector<64x16xf32>
    %cst_20 = arith.constant -2.241400e-01 : f32
    %49 = vector.broadcast %cst_20 : f32 to vector<64x16xf32>
    %50 = arith.mulf %49, %7 : vector<64x16xf32>
    %51 = arith.addf %48, %50 : vector<64x16xf32>
    %cst_21 = arith.constant -1.294100e-01 : f32
    %52 = vector.broadcast %cst_21 : f32 to vector<64x16xf32>
    %53 = arith.mulf %52, %3 : vector<64x16xf32>
    %cst_22 = arith.constant -4.829600e-01 : f32
    %54 = vector.broadcast %cst_22 : f32 to vector<64x16xf32>
    %55 = arith.mulf %54, %7 : vector<64x16xf32>
    %56 = arith.addf %53, %55 : vector<64x16xf32>
    %57 = vector.extract_strided_slice %56 {offsets = [63, 0], sizes = [1, 16], strides = [1, 1]} : vector<64x16xf32> to vector<1x16xf32>
    %58 = vector.extract_strided_slice %56 {offsets = [0, 0], sizes = [63, 16], strides = [1, 1]} : vector<64x16xf32> to vector<63x16xf32>
    %59 = tpu.concatenate %57, %58 in 0 : vector<1x16xf32>, vector<63x16xf32> -> vector<64x16xf32>
    %cst_23 = arith.constant 0.000000e+00 : f32
    %60 = vector.shape_cast %26 : vector<64x1xi1> to vector<64x1xi1>
    %61 = vector.broadcast %60 : vector<64x1xi1> to vector<64x16xi1>
    %62 = vector.broadcast %cst_23 : f32 to vector<64x16xf32>
    %63 = arith.select %61, %59, %62 : vector<64x16xi1>, vector<64x16xf32>
    %64 = arith.addf %51, %63 : vector<64x16xf32>
    %cst_24 = arith.constant 2.241400e-01 : f32
    %65 = vector.broadcast %cst_24 : f32 to vector<64x16xf32>
    %66 = arith.mulf %65, %1 : vector<64x16xf32>
    %cst_25 = arith.constant 8.365200e-01 : f32
    %67 = vector.broadcast %cst_25 : f32 to vector<64x16xf32>
    %68 = arith.mulf %67, %5 : vector<64x16xf32>
    %69 = arith.addf %66, %68 : vector<64x16xf32>
    %cst_26 = arith.constant 4.829600e-01 : f32
    %70 = vector.broadcast %cst_26 : f32 to vector<64x16xf32>
    %71 = arith.mulf %70, %1 : vector<64x16xf32>
    %cst_27 = arith.constant -1.294100e-01 : f32
    %72 = vector.broadcast %cst_27 : f32 to vector<64x16xf32>
    %73 = arith.mulf %72, %5 : vector<64x16xf32>
    %74 = arith.addf %71, %73 : vector<64x16xf32>
    %75 = vector.extract_strided_slice %74 {offsets = [1, 0], sizes = [63, 16], strides = [1, 1]} : vector<64x16xf32> to vector<63x16xf32>
    %76 = vector.extract_strided_slice %74 {offsets = [0, 0], sizes = [1, 16], strides = [1, 1]} : vector<64x16xf32> to vector<1x16xf32>
    %77 = tpu.concatenate %75, %76 in 0 : vector<63x16xf32>, vector<1x16xf32> -> vector<64x16xf32>
    %cst_28 = arith.constant 0.000000e+00 : f32
    %78 = vector.shape_cast %28 : vector<64x1xi1> to vector<64x1xi1>
    %79 = vector.broadcast %78 : vector<64x1xi1> to vector<64x16xi1>
    %80 = vector.broadcast %cst_28 : f32 to vector<64x16xf32>
    %81 = arith.select %79, %77, %80 : vector<64x16xi1>, vector<64x16xf32>
    %82 = arith.addf %69, %81 : vector<64x16xf32>
    %cst_29 = arith.constant 2.241400e-01 : f32
    %83 = vector.broadcast %cst_29 : f32 to vector<64x16xf32>
    %84 = arith.mulf %83, %3 : vector<64x16xf32>
    %cst_30 = arith.constant 8.365200e-01 : f32
    %85 = vector.broadcast %cst_30 : f32 to vector<64x16xf32>
    %86 = arith.mulf %85, %7 : vector<64x16xf32>
    %87 = arith.addf %84, %86 : vector<64x16xf32>
    %cst_31 = arith.constant 4.829600e-01 : f32
    %88 = vector.broadcast %cst_31 : f32 to vector<64x16xf32>
    %89 = arith.mulf %88, %3 : vector<64x16xf32>
    %cst_32 = arith.constant -1.294100e-01 : f32
    %90 = vector.broadcast %cst_32 : f32 to vector<64x16xf32>
    %91 = arith.mulf %90, %7 : vector<64x16xf32>
    %92 = arith.addf %89, %91 : vector<64x16xf32>
    %93 = vector.extract_strided_slice %92 {offsets = [1, 0], sizes = [63, 16], strides = [1, 1]} : vector<64x16xf32> to vector<63x16xf32>
    %94 = vector.extract_strided_slice %92 {offsets = [0, 0], sizes = [1, 16], strides = [1, 1]} : vector<64x16xf32> to vector<1x16xf32>
    %95 = tpu.concatenate %93, %94 in 0 : vector<63x16xf32>, vector<1x16xf32> -> vector<64x16xf32>
    %cst_33 = arith.constant 0.000000e+00 : f32
    %96 = vector.shape_cast %28 : vector<64x1xi1> to vector<64x1xi1>
    %97 = vector.broadcast %96 : vector<64x1xi1> to vector<64x16xi1>
    %98 = vector.broadcast %cst_33 : f32 to vector<64x16xf32>
    %99 = arith.select %97, %95, %98 : vector<64x16xi1>, vector<64x16xf32>
    %100 = arith.addf %87, %99 : vector<64x16xf32>
    %cst_34 = arith.constant 0.000000e+00 : f32
    %101 = vector.broadcast %cst_34 : f32 to vector<64x1xf32>
    %102 = tpu.concatenate %101, %46, %101 in 1 : vector<64x1xf32>, vector<64x16xf32>, vector<64x1xf32> -> vector<64x18xf32>
    %103 = tpu.concatenate %101, %64, %101 in 1 : vector<64x1xf32>, vector<64x16xf32>, vector<64x1xf32> -> vector<64x18xf32>
    %104 = tpu.concatenate %101, %82, %101 in 1 : vector<64x1xf32>, vector<64x16xf32>, vector<64x1xf32> -> vector<64x18xf32>
    %105 = tpu.concatenate %101, %100, %101 in 1 : vector<64x1xf32>, vector<64x16xf32>, vector<64x1xf32> -> vector<64x18xf32>
    %c0_35 = arith.constant 0 : index
    %c0_36 = arith.constant 0 : index
    %106 = vector.load %arg6[%c0_35, %c0_36] : memref<18x32xf32, #tpu.memory_space<vmem>>, vector<18x32xf32>
    %c0_37 = arith.constant 0 : index
    %c0_38 = arith.constant 0 : index
    %107 = vector.load %arg7[%c0_37, %c0_38] : memref<18x32xf32, #tpu.memory_space<vmem>>, vector<18x32xf32>
    %cst_39 = arith.constant dense<0.000000e+00> : vector<64x32xf32>
    %108 = tpu.matmul %102, %106, %cst_39 {dimension_numbers = #tpu.dot_dimension_numbers<[1], [0], [0], [1], [0, 0, 1, 1], [], []>, precision = #tpu.contract_precision<fp32>} : vector<64x18xf32>, vector<18x32xf32>, vector<64x32xf32> -> vector<64x32xf32>
    %cst_40 = arith.constant dense<0.000000e+00> : vector<64x32xf32>
    %109 = tpu.matmul %103, %107, %cst_40 {dimension_numbers = #tpu.dot_dimension_numbers<[1], [0], [0], [1], [0, 0, 1, 1], [], []>, precision = #tpu.contract_precision<fp32>} : vector<64x18xf32>, vector<18x32xf32>, vector<64x32xf32> -> vector<64x32xf32>
    %110 = arith.addf %108, %109 : vector<64x32xf32>
    %cst_41 = arith.constant dense<0.000000e+00> : vector<64x32xf32>
    %111 = tpu.matmul %104, %106, %cst_41 {dimension_numbers = #tpu.dot_dimension_numbers<[1], [0], [0], [1], [0, 0, 1, 1], [], []>, precision = #tpu.contract_precision<fp32>} : vector<64x18xf32>, vector<18x32xf32>, vector<64x32xf32> -> vector<64x32xf32>
    %cst_42 = arith.constant dense<0.000000e+00> : vector<64x32xf32>
    %112 = tpu.matmul %105, %107, %cst_42 {dimension_numbers = #tpu.dot_dimension_numbers<[1], [0], [0], [1], [0, 0, 1, 1], [], []>, precision = #tpu.contract_precision<fp32>} : vector<64x18xf32>, vector<18x32xf32>, vector<64x32xf32> -> vector<64x32xf32>
    %113 = arith.addf %111, %112 : vector<64x32xf32>
    %c0_43 = arith.constant 0 : index
    %c0_44 = arith.constant 0 : index
    %c0_45 = arith.constant 0 : index
    %114 = vector.load %arg8[%c0_43, %c0_44, %c0_45] : memref<1x64x64xf32, #tpu.memory_space<vmem>>, vector<1x64x32xf32>
    %115 = vector.shape_cast %114 : vector<1x64x32xf32> to vector<64x32xf32>
    %116 = vector.shape_cast %110 : vector<64x32xf32> to vector<1x64x32xf32>
    tpu.vector_store %arg8[%c0_43, %c0_44, %c0_45], %116 {strides = array<i32>} : memref<1x64x64xf32, #tpu.memory_space<vmem>>, vector<1x64x32xf32>,
    %c0_46 = arith.constant 0 : index
    %c0_47 = arith.constant 0 : index
    %c32 = arith.constant 32 : index
    %117 = vector.load %arg8[%c0_46, %c0_47, %c32] : memref<1x64x64xf32, #tpu.memory_space<vmem>>, vector<1x64x32xf32>
    %118 = vector.shape_cast %117 : vector<1x64x32xf32> to vector<64x32xf32>
    %119 = vector.shape_cast %113 : vector<64x32xf32> to vector<1x64x32xf32>
    tpu.vector_store %arg8[%c0_46, %c0_47, %c32], %119 {strides = array<i32>} : memref<1x64x64xf32, #tpu.memory_space<vmem>>, vector<1x64x32xf32>,
    return
  }
  func.func @transform_0(%arg0: i32, %arg1: i32) -> (i32, i32, i32) {
    %c0_i32 = arith.constant 0 : i32
    %0 = arith.addi %c0_i32, %arg1 : i32
    %c0_i32_0 = arith.constant 0 : i32
    %c0_i32_1 = arith.constant 0 : i32
    return %arg0, %0, %c0_i32_0 : i32, i32, i32
  }
  func.func @transform_1(%arg0: i32, %arg1: i32) -> (i32, i32, i32) {
    %c1_i32 = arith.constant 1 : i32
    %0 = arith.addi %c1_i32, %arg1 : i32
    %c0_i32 = arith.constant 0 : i32
    %c0_i32_0 = arith.constant 0 : i32
    return %arg0, %0, %c0_i32 : i32, i32, i32
  }
  func.func @transform_2(%arg0: i32, %arg1: i32) -> (i32, i32, i32) {
    %c2_i32 = arith.constant 2 : i32
    %0 = arith.addi %c2_i32, %arg1 : i32
    %c0_i32 = arith.constant 0 : i32
    %c0_i32_0 = arith.constant 0 : i32
    return %arg0, %0, %c0_i32 : i32, i32, i32
  }
  func.func @transform_3(%arg0: i32, %arg1: i32) -> (i32, i32, i32) {
    %c3_i32 = arith.constant 3 : i32
    %0 = arith.addi %c3_i32, %arg1 : i32
    %c0_i32 = arith.constant 0 : i32
    %c0_i32_0 = arith.constant 0 : i32
    return %arg0, %0, %c0_i32 : i32, i32, i32
  }
  func.func @transform_4(%arg0: i32, %arg1: i32) -> (i32, i32) {
    %c0_i32 = arith.constant 0 : i32
    %c0_i32_0 = arith.constant 0 : i32
    %c0_i32_1 = arith.constant 0 : i32
    return %c0_i32, %c0_i32_0 : i32, i32
  }
  func.func @transform_5(%arg0: i32, %arg1: i32) -> (i32, i32) {
    %c0_i32 = arith.constant 0 : i32
    %c0_i32_0 = arith.constant 0 : i32
    %c0_i32_1 = arith.constant 0 : i32
    return %c0_i32, %c0_i32_0 : i32, i32
  }
  func.func @transform_6(%arg0: i32, %arg1: i32) -> (i32, i32, i32) {
    %c0_i32 = arith.constant 0 : i32
    %c0_i32_0 = arith.constant 0 : i32
    return %arg0, %arg1, %c0_i32 : i32, i32, i32
  }
}

</mosaic_0001>

<bundles_post_ra>
// kernel: db4_uping_forward.1
= control target key start
LH: loop header
LB: loop body
LE: loop exit
PB: predicated region body
PF: predicated region fallthrough
CT: control target
= control target key end

     0   :  { %s5050_s0 = inlined_call_operand.hbm [shape: f32[2,256,16], index: 0, kind: input, shape index: {}, may-alias: {0,1,2,3}]   ;;  %s5051_s1 = inlined_call_operand.hbm [shape: f32[2,256,16], index: 1, kind: input, shape index: {}, may-alias: {0,1,2,3}]   ;;  %s5052_s2 = inlined_call_operand.hbm [shape: f32[2,256,16], index: 2, kind: input, shape index: {}, may-alias: {0,1,2,3}]   ;;  %s5053_s3 = inlined_call_operand.hbm [shape: f32[2,256,16], index: 3, kind: input, shape index: {}, may-alias: {0,1,2,3}]   ;;  %s5054_s4 = inlined_call_operand.hbm [shape: f32[18,32], index: 4, kind: input, shape index: {}]   ;;  %s5055_s5 = inlined_call_operand.hbm [shape: f32[18,32], index: 5, kind: input, shape index: {}]   ;;  %s5056_s6 = inlined_call_operand.vmem [shape: f32[2,64,64], index: 6, kind: output, shape index: {}]  }
   0x1   :  { %5089 = sst [smem:[#allocation28_spill]] %s5051_s1 }
   0x2   :  { %5090 = sst [smem:[#allocation29_spill]] %s5054_s4 }
   0x3   :  { %11 = vsyncpa [#allocation3], 0 }
   0x4   :  { %13 = vsyncpa [#allocation3 + $0x1], 0 }
   0x5   :  { %14 = vsyncpa [#allocation5], 0 }
   0x6   :  { %16 = vsyncpa [#allocation5 + $0x1], 0 }
   0x7   :  { %17 = vsyncpa [#allocation8], 0 }
   0x8   :  { %19 = vsyncpa [#allocation8 + $0x1], 0 }
   0x9   :  { %20 = vsyncpa [#allocation11], 0  ;;  %s3596_s21 = smov 0   ;;  %s3598_s22 = smov 0  }
   0xa   :  { %s3600_s23 = smov 0   ;;  %s3602_s24 = smov 0  }
   0xb   :  { %s3604_s25 = smov 0   ;;  %s3606_s26 = smov 0  }
   0xc LB: > { %5091 = sst [smem:[#allocation17_spill]] %s3549_s25  ;;  %s5057_s27 = sadd.s32 4294967295, %s3553_s26   ;;  %s3553_s26 = sphi %s3606_s26, %s26_s26   ;;  %s3549_s25 = sphi %s3604_s25, %s5155_s25   ;;  %s3545_s24 = sphi %s3602_s24, %s5154_s24   ;;  %s3541_s23 = sphi %s3600_s23, %s5158_s23   ;;  %s3537_s22 = sphi %s3598_s22, %s5157_s22   ;;  %s3533_s21 = sphi %s3596_s21, %s5156_s21  }
   0xd   : > { %p60_p0 = scmp.ne.s32.totalorder %s3537_s22, %s3533_s21  ;;  %p3628_p1 = scmp.eq.s32.totalorder %s5057_s27, 0 }
   0xe   : > { %p3164_p2 = scmp.ge.s32.totalorder %s3553_s26, 1  ;;  %p231_p3 = scmp.lt.s32.totalorder %s3553_s26, 3 }
   0xf   : > { %p3636_p4 = por %p3628_p1, %p60_p0  ;;  %s5094_s4 = sld [smem:[#allocation29_spill]] }
  0x10   : > { %p3643_p5 = pnand %p3164_p2, %p231_p3  ;;  %s3555_s10 = smov [#allocation9]  }
  0x11   : > { %s244_s11 = sshll.u32 %s3555_s10, 4  ;;  %s5058_s13 = smov 128   ;;  %s245_s11 = int_to_ptr.vmem [resolvable:$true] %s244_s11 }
  0x12   : > { %p3212_p6 = pneg %p3643_p5  ;;  %s5060_s14 = smov 8  }
  0x13   : > { %s38_s15 = sadd.s32 1, %s3549_s25  ;;  %s47_s16 = sadd.s32 1, %s3541_s23 }
  0x14   : > { %p3651_p7 = pnand %p3212_p6, %p3628_p1  ;;  %p40_p8 = scmp.ge.s32.totalorder %s38_s15, 2 }
  0x15   : > { %s242_s8 = sshll.u32 %s5094_s4, 4  ;;  %p54_p9 = scmp.ne.s32.totalorder %s3541_s23, %s3537_s22  ;;  %s243_s8 = int_to_ptr.hbm [resolvable:$true] %s242_s8 }
  0x16   : > { %3215 = dma.hbm_to_vmem [thread:$0]  (!%p3651_p7), %s243_s8, 384, %s245_s11, [#allocation8], %s5058_s13, %s5058_s13, %s5060_s14  }
  0x17   : > { %p55_p10 = scmp.eq.s32.totalorder %s3553_s26, 0  ;;  %s5160_s15 = smov (%p40_p8, %s38_s15), 0 }
  0x18   : > { %5097 = sst [smem:[#allocation18_spill]] %s5160_s15  ;;  %p3234_p12 = scmp.lt.s32.totalorder %s3553_s26, 2 }
  0x19   : > { %p56_p11 = por %p55_p10, %p54_p9  ;;  %s42_s17 = ssub.s32 %s3549_s25, %s5160_s15 }
  0x1a   : > { %s272_s18 = sand.u32 1, %s3541_s23   ;;  %p45_p13 = scmp.eq.s32.totalorder %s42_s17, 0 }
  0x1b   : > { %s3671_s19 = sshll.u32 %s272_s18, 6  ;;  %s3674_s20 = sshll.u32 %s3549_s25, 8 }
  0x1c   : > { %p3676_p0 = pnand %p3234_p12, %p56_p11  ;;  %s5064_s7 = sand.u32 1, %s3553_s26  }
  0x1d   : > { %s3681_s30 = scalar_select %p45_p13, %s3541_s23, %s47_s16  }
  0x1e   : > { %s5100_s1 = sld [smem:[#allocation28_spill]]  ;;  %s300_s17 = scalar_lea.vmem [#allocation4], %s3671_s19 }
  0x1f   : > { %5099 = sst [smem:[#allocation19_spill]] %s3681_s30  ;;  %s311_s27 = sshll.u32 %s300_s17, 4  ;;  %s312_s27 = int_to_ptr.vmem [resolvable:$true] %s311_s27 }
  0x20   : > { %s256_s16 = sshll.u32 %s5055_s5, 4  ;;  %s297_s25 = scalar_lea.sflag [#allocation5], %s5064_s7  ;;  %s257_s16 = int_to_ptr.hbm [resolvable:$true] %s256_s16 }
  0x21   : > { %s5101_s30 = smov 8   ;;  %s5102_s8 = smov 128  }
  0x22   : > { %s3558_s10 = smov [#allocation10]   ;;  %s283_s15 = scalar_lea.hbm %s5050_s0, %s3674_s20 }
  0x23   : > { %s276_s17 = scalar_lea.vmem [#allocation2], %s3671_s19 }
  0x24   : > { %s3025_s11 = scalar_lea.hbm %s5100_s1, %s3674_s20  ;;  %s286_s7 = sshll.u32 %s276_s17, 4  ;;  %s287_s7 = int_to_ptr.vmem [resolvable:$true] %s286_s7 }
  0x25   : > { %s3026_s13 = scalar_lea.hbm %s3025_s11, 64  ;;  %s258_s11 = sshll.u32 %s3558_s10, 4  ;;  %s259_s11 = int_to_ptr.vmem [resolvable:$true] %s258_s11 }
  0x26   : > { %s309_s14 = sshll.u32 %s3026_s13, 4  ;;  %s284_s1 = sshll.u32 %s283_s15, 4  ;;  %s310_s14 = int_to_ptr.hbm [resolvable:$true] %s309_s14  ;;  %s285_s1 = int_to_ptr.hbm [resolvable:$true] %s284_s1 }
  0x27   : > { %3225 = dma.hbm_to_vmem [thread:$0]  (!%p3676_p0), %s310_s14, 1024, %s312_s27, %s297_s25, %s5102_s8, %s5102_s8, %s5101_s30  }
  0x28   : > { %3218 = dma.hbm_to_vmem [thread:$0]  (!%p3651_p7), %s257_s16, 384, %s259_s11, [#allocation11], %s5102_s8, %s5102_s8, %s5101_s30  }
  0x29   : > { %s273_s27 = scalar_lea.sflag [#allocation3], %s272_s18  ;;  %s3034_s16 = scalar_lea.hbm %s5052_s2, %s3674_s20 }
  0x2a   : > { %3222 = dma.hbm_to_vmem [thread:$0]  (!%p3676_p0), %s285_s1, 1024, %s287_s7, %s273_s27, %s5102_s8, %s5102_s8, %s5101_s30  }
  0x2b   : > { %s325_s10 = scalar_lea.vmem [#allocation6], %s3671_s19  ;;  %s3035_s4 = scalar_lea.hbm %s3034_s16, 128 }
  0x2c   : > { %s336_s11 = sshll.u32 %s325_s10, 4  ;;  %s334_s13 = sshll.u32 %s3035_s4, 4  ;;  %s337_s11 = int_to_ptr.vmem [resolvable:$true] %s336_s11  ;;  %s335_s13 = int_to_ptr.hbm [resolvable:$true] %s334_s13 }
  0x2d   : > { %s3043_s18 = scalar_lea.hbm %s5053_s3, %s3674_s20  ;;  %s350_s7 = scalar_lea.vmem [#allocation7], %s3671_s19 }
  0x2e   : > { %3228 = dma.hbm_to_vmem [thread:$0]  (!%p3676_p0), %s335_s13, 1024, %s337_s11, %s297_s25, %s5102_s8, %s5102_s8, %s5101_s30  }
  0x2f   : > { %s3044_s1 = scalar_lea.hbm %s3043_s18, 192  ;;  %s361_s27 = sshll.u32 %s350_s7, 4  ;;  %s362_s27 = int_to_ptr.vmem [resolvable:$true] %s361_s27 }
  0x30   : > { %s359_s12 = sshll.u32 %s3044_s1, 4  ;;  %s5103_s14 = sand.u32 1, %s3553_s26   ;;  %s360_s12 = int_to_ptr.hbm [resolvable:$true] %s359_s12 }
  0x31   : > { %s347_s16 = scalar_lea.sflag [#allocation8], %s5103_s14  ;;  %373 = sbr.rel (%p3643_p5) target bundleno = 836 (0x344), region = 44 }
  0x32   : > { %3231 = dma.hbm_to_vmem [thread:$0]  (!%p3676_p0), %s360_s12, 1024, %s362_s27, %s347_s16, %s5102_s8, %s5102_s8, %s5101_s30  }
  0x36   : > { %s375_s20 = sand.u32 1, %s3537_s22  }
  0x37   : > { %s3181_s25 = sshll.u32 %s375_s20, 6  ;;  %s376_s10 = scalar_lea.sflag [#allocation3], %s375_s20 }
  0x38   : > { %s3739_s19 = scalar_lea.vmem [#allocation2], %s3181_s25 }
  0x39   : > { %3512 = dma.done.wait (%p3636_p4), %s376_s10, 1024  }
  0x3a   : > { %3514 = vsyncadd (%p3636_p4), %s376_s10, 4294966272  ;;  %s5104_s21 = sadd.s32 4294967295, %s3553_s26   ;;  %s3747_s8 = scalar_lea.vmem [#allocation4], %s3181_s25 }
  0x3b   : > { %s385_s11 = sand.u32 1, %s5104_s21  }
  0x3c   : > { %s386_s30 = scalar_lea.sflag [#allocation5], %s385_s11 }
  0x3d   : > { %3516 = dma.done.wait (%p3636_p4), %s386_s30, 2048  }
  0x3e   : > { %3518 = vsyncadd (%p3636_p4), %s386_s30, 4294965248  ;;  %s3753_s9 = scalar_lea.vmem [#allocation6], %s3181_s25  ;;  %s406_s4 = scalar_lea.sflag [#allocation8], %s385_s11 }
  0x3f   : > { %s3755_s13 = scalar_lea.vmem [#allocation7], %s3181_s25 }
  0x40   : > { %3520 = dma.done.wait (%p3636_p4), %s406_s4, 1024  }
  0x41   : > { %3522 = vsyncadd (%p3636_p4), %s406_s4, 4294966272 }
  0x42   : > { %3524 = dma.done.wait (%p3628_p1), [#allocation8], 384  }
  0x43   : > { %3526 = vsyncadd (%p3628_p1), [#allocation8], 4294966912 }
  0x44   : > { %3528 = dma.done.wait (%p3628_p1), [#allocation11], 384  }
  0x45   : > { %3530 = vsyncadd (%p3628_p1), [#allocation11], 4294966912  ;;  %v517_v0 = vlaneseq  ;;  %v3772_v2 = vld [vmem:[%s3747_s8] sm:$0xff]  ;;  %v3775_v3 = vld [vmem:[%s3747_s8 + $0x38] sm:$0xff]  ;;  %vm696_vm1 = vcmask 1040384   ;;  %s3559_s28 = smov 1  }
  0x46   : > { %v3778_v4 = vld [vmem:[%s3755_s13] sm:$0xff]  ;;  %v3781_v5 = vld [vmem:[%s3755_s13 + $0x38] sm:$0xff]  ;;  %v752_v8 = vmul.f32 0.83652, %v3772_v2  ;;  %v776_v11 = vmul.f32 -0.12941, %v3772_v2 }
  0x47   : > { %v3769_v1 = vshrl.u32 %v517_v0, 7  ;;  %v3785_v7 = vld [vmem:[%s3753_s9] sm:$0xff]  ;;  %v783_v12 = vmul.f32 -0.12941, %v3775_v3  ;;  %v784_v13 = vmul.f32 -0.48296, %v3778_v4 }
  0x48   : > { %v760_v14 = vmul.f32 -0.22414, %v3778_v4  ;;  %v791_v15 = vmul.f32 -0.48296, %v3781_v5  ;;  %v3796_v16 = vld [vmem:[%s3747_s8 + $0x8] sm:$0xff]  ;;  %v3814_v27 = vld [vmem:[%s3747_s8 + $0x10] sm:$0xff] }
  0x49   : > { %v530_v6 = vand.u32 15, %v3769_v1  ;;  %v520_v9 = vadd.s32 16, %v3769_v1  ;;  %v524_v10 = vadd.s32 48, %v3769_v1  ;;  %v792_v18 = vadd.f32 %v784_v13, %v776_v11  ;;  %v3803_v19 = vld [vmem:[%s3755_s13 + $0x8] sm:$0xff]  ;;  %v3817_v28 = vld [vmem:[%s3755_s13 + $0x10] sm:$0xff]  ;;  %v3820_v30 = vld [vmem:[%s3753_s9 + $0x38] sm:$0xff] }
  0x4a   : > { %v3806_v20 = vadd.s32 32, %v3769_v1  ;;  %v670_v21 = vmul.f32 -0.48296, %v3785_v7  ;;  %v3809_v22 = vadd.f32 %v791_v15, %v783_v12  ;;  %v777_v23 = vmul.f32 -0.12941, %v3796_v16  ;;  %v3824_v33 = vld [vmem:[%s3739_s19] sm:$0xff] }
  0x4b   : > { %vm3798_vm0 = vcmp.ne.s32.totalorder %v530_v6, 0  ;;  %v544_v24 = vand.u32 15, %v520_v9  ;;  %v810_v25 = vrot.slane %v792_v18, 7  ;;  %v785_v26 = vmul.f32 -0.48296, %v3803_v19  ;;  %v3827_v34 = vld [vmem:[%s3739_s19 + $0x38] sm:$0xff] }
  0x4c   : > { %v572_v29 = vand.u32 15, %v524_v10  ;;  %v768_v31 = vadd.f32 %v760_v14, %v752_v8  ;;  %v5065_v32 = vrot.slane %v3809_v22, 7  ;;  %v753_v35 = vmul.f32 0.83652, %v3796_v16  ;;  %v3832_v38 = vld [vmem:[%s3753_s9 + $0x8] sm:$0xff]  ;;  %v3850_v48 = vld [vmem:[%s3747_s8 + $0x18] sm:$0xff] }
  0x4d   : > { %v761_v36 = vmul.f32 -0.22414, %v3803_v19  ;;  %v793_v37 = vadd.f32 %v785_v26, %v777_v23  ;;  %v754_v39 = vmul.f32 0.83652, %v3814_v27  ;;  %v3836_v40 = vld [vmem:[%s3739_s19 + $0x8] sm:$0xff]  ;;  %v558_v49 = vand.u32 15, %v3806_v20 }
  0x4e   : > { %v832_v41 = vsel %vm696_vm1, %v5065_v32, %v810_v25  ;;  %v762_v42 = vmul.f32 -0.22414, %v3817_v28  ;;  %v778_v43 = vmul.f32 -0.12941, %v3814_v27  ;;  %v786_v44 = vmul.f32 -0.48296, %v3817_v28 }
  0x4f   : > { %v3845_v45 = vmul.f32 -0.48296, %v3820_v30  ;;  %v833_v46 = vsel %vm3798_vm0, %v832_v41, 0.0  ;;  %v811_v47 = vrot.slane %v793_v37, 7  ;;  %v662_v51 = vmul.f32 -0.12941, %v3824_v33 }
  0x50   : > { %v841_v50 = vadd.f32 %v833_v46, %v768_v31  ;;  %v3855_v52 = vmul.f32 -0.12941, %v3827_v34  ;;  %v794_v53 = vadd.f32 %v786_v44, %v778_v43  ;;  %v3858_v54 = vld [vmem:[%s3755_s13 + $0x18] sm:$0xff]  ;;  %vm3860_vm2 = vcmp.ne.s32.totalorder %v544_v24, 0  ;;  %v3867_v58 = vld [vmem:[%s3747_s8 + $0x28] sm:$0xff]  ;;  %v3871_v60 = vld [vmem:[%s3753_s9 + $0x10] sm:$0xff] }
  0x51   : > { %v671_v56 = vmul.f32 -0.48296, %v3832_v38  ;;  %v663_v57 = vmul.f32 -0.12941, %v3836_v40  ;;  %v769_v59 = vadd.f32 %v761_v36, %v753_v35  ;;  %v770_v61 = vadd.f32 %v762_v42, %v754_v39  ;;  %v3874_v63 = vld [vmem:[%s3739_s19 + $0x10] sm:$0xff]  ;;  %v3881_v8 = vld [vmem:[%s3755_s13 + $0x28] sm:$0xff] }
  0x52   : > { %1118 = vrot.lane.b32.xlu0 %v841_v50, %s3559_s28  ;;  %v813_v62 = vrot.slane %v794_v53, 7  ;;  %v779_v0 = vmul.f32 -0.12941, %v3850_v48  ;;  %v3878_v6 = vld [vmem:[%s3747_s8 + $0x30] sm:$0xff]  ;;  %vm3886_vm3 = vcmp.ne.s32.totalorder %v572_v29, 0  ;;  %v812_v11 = vsel %vm696_vm1, %v810_v25, %v811_v47  ;;  %v3906_v41 = vld [vmem:[%s3747_s8 + $0x20] sm:$0xff] }
  0x53   : > { %v3884_v9 = vld [vmem:[%s3755_s13 + $0x30] sm:$0xff]  ;;  %v755_v12 = vmul.f32 0.83652, %v3850_v48  ;;  %v763_v13 = vmul.f32 -0.22414, %v3858_v54  ;;  %v3898_v26 = vadd.f32 %v670_v21, %v662_v51  ;;  %v842_v35 = vadd.f32 %v812_v11, %v769_v59  ;;  %v3909_v42 = vld [vmem:[%s3753_s9 + $0x18] sm:$0xff] }
  0x54   : > { %v787_v14 = vmul.f32 -0.48296, %v3858_v54  ;;  %v814_v15 = vsel %vm696_vm1, %v811_v47, %v813_v62  ;;  %v758_v18 = vmul.f32 0.83652, %v3878_v6  ;;  %v766_v23 = vmul.f32 -0.22414, %v3884_v9 }
  0x55   : > { %v781_v24 = vmul.f32 -0.12941, %v3867_v58  ;;  %v835_v25 = vsel %vm3860_vm2, %v814_v15, 0.0  ;;  %v782_v31 = vmul.f32 -0.12941, %v3878_v6  ;;  %v771_v44 = vadd.f32 %v763_v13, %v755_v12  ;;  %v3914_v47 = vld [vmem:[%s3755_s13 + $0x20] sm:$0xff] }
  0x56   : > { %v795_v29 = vadd.f32 %v787_v14, %v779_v0  ;;  %v843_v36 = vadd.f32 %v835_v25, %v770_v61  ;;  %v789_v37 = vmul.f32 -0.48296, %v3881_v8  ;;  %v790_v39 = vmul.f32 -0.48296, %v3884_v9  ;;  %v505_v61 = vld [vmem:[%s3753_s9 + $0x20] sm:$0xff]  ;;  %v3919_v0 = vld [vmem:[%s3739_s19 + $0x18] sm:$0xff] }
  0x57   : > { %v672_v21 = vmul.f32 -0.48296, %v3871_v60  ;;  %v664_v43 = vmul.f32 -0.12941, %v3874_v63  ;;  %v679_v50 = vadd.f32 %v671_v56, %v663_v57  ;;  %v774_v51 = vadd.f32 %v766_v23, %v758_v18  ;;  %v489_v11 = vld [vmem:[%s3739_s19 + $0x20] sm:$0xff]  ;;  %p476_p1 = scmp.lt.s32.totalorder %s3545_s24, 1 }
  0x58   : > { %v815_v46 = vrot.slane %v795_v29, 7  ;;  %1122 = vrot.lane.b32.xlu1 %v843_v36, %s3559_s28  ;;  %v797_v53 = vadd.f32 %v789_v37, %v781_v24  ;;  %v798_v59 = vadd.f32 %v790_v39, %v782_v31  ;;  %v673_v15 = vmul.f32 -0.48296, %v3909_v42  ;;  %s3560_s18 = smov 32  }
  0x59   : > { %v756_v25 = vmul.f32 0.83652, %v3906_v41  ;;  %v780_v12 = vmul.f32 -0.12941, %v3906_v41  ;;  %v764_v56 = vmul.f32 -0.22414, %v3914_v47 }
  0x5a   : > { %v816_v14 = vsel %vm696_vm1, %v813_v62, %v815_v46  ;;  %1120 = vrot.lane.b32.xlu0 %v842_v35, %s3559_s28  ;;  %v819_v13 = vrot.slane %v797_v53, 7  ;;  %v821_v29 = vrot.slane %v798_v59, 7  ;;  %v788_v57 = vmul.f32 -0.48296, %v3914_v47  ;;  %s5162_s24 = smov (!%p476_p1, %s3545_s24), 1 }
  0x5b   : > { %v844_v18 = vadd.f32 %v816_v14, %v771_v44  ;;  %v674_v23 = vmul.f32 -0.48296, %v505_v61  ;;  %v665_v24 = vmul.f32 -0.12941, %v3919_v0  ;;  %v666_v31 = vmul.f32 -0.12941, %v489_v11 }
  0x5c   : > { %v822_v62 = vsel %vm696_vm1, %v819_v13, %v821_v29  ;;  %v796_v36 = vadd.f32 %v788_v57, %v780_v12  ;;  %v759_v37 = vmul.f32 0.83652, %v3775_v3  ;;  %v767_v39 = vmul.f32 -0.22414, %v3781_v5  ;;  %s3195_s29 = sshll.u32 %s5162_s24, 6 }
  0x5d   : > { %v697_v35 = vrot.slane %v3898_v26, 7  ;;  %v3934_v53 = vadd.f32 %v672_v21, %v664_v43  ;;  %v698_v59 = vrot.slane %v679_v50, 7  ;;  %v839_v32 = vsel %vm3886_vm3, %v822_v62, 0.0  ;;  %s4785_s24 = scalar_lea.vmem %s5056_s6, %s3195_s29 }
  0x5e   : > { %v847_v44 = vadd.f32 %v839_v32, %v774_v51  ;;  %vm3940_vm4 = vcmp.ne.s32.totalorder %v558_v49, 0  ;;  %v772_v12 = vadd.f32 %v764_v56, %v756_v25  ;;  %v817_v57 = vrot.slane %v796_v36, 7  ;;  %v3964_v56 = vld [vmem:[%s3739_s19 + $0x28] sm:$0xff] }
  0x5f   : > { %v3944_v3 = vadd.f32 %v673_v15, %v665_v24  ;;  %v682_v5 = vadd.f32 %v674_v23, %v666_v31  ;;  %v639_v26 = vmul.f32 0.83652, %v3836_v40  ;;  %v647_v21 = vmul.f32 -0.22414, %v3832_v38 }
  0x60   : > { %1124 = vrot.lane.b32.xlu1 %v844_v18, %s3559_s28  ;;  %v818_v32 = vsel %vm696_vm1, %v815_v46, %v817_v57  ;;  %v775_v20 = vadd.f32 %v767_v39, %v759_v37  ;;  %v757_v49 = vmul.f32 0.83652, %v3867_v58  ;;  %v765_v43 = vmul.f32 -0.22414, %v3881_v8 }
  0x61   : > { %v3954_v50 = vadd.f32 %v3845_v45, %v3855_v52  ;;  %v700_v51 = vrot.slane %v3934_v53, 7  ;;  %v837_v40 = vsel %vm3940_vm4, %v818_v32, 0.0  ;;  %v5113_v38 = vrot.slane %v3809_v22, 7  ;;  %v3969_v52 = vld [vmem:[%s3753_s9 + $0x28] sm:$0xff] }
  0x62   : > { %1130 = vrot.lane.b32.xlu0 %v847_v44, %s3559_s28  ;;  %v845_v46 = vadd.f32 %v837_v40, %v772_v12  ;;  %v655_v25 = vadd.f32 %v647_v21, %v639_v26  ;;  %v702_v18 = vrot.slane %v3944_v3, 7  ;;  %v704_v23 = vrot.slane %v682_v5, 7 }
  0x63   : > { %v823_v15 = vsel %vm696_vm1, %v821_v29, %v5113_v38  ;;  %v699_v45 = vsel %vm696_vm1, %v697_v35, %v698_v59  ;;  %v773_v31 = vadd.f32 %v765_v43, %v757_v49  ;;  %v640_v22 = vmul.f32 0.83652, %v3874_v63 }
  0x64   : > { %1126 = vrot.lane.b32.xlu2 %v845_v46, %s3559_s28  ;;  %v848_v24 = vadd.f32 %v823_v15, %v775_v20  ;;  %v648_v29 = vmul.f32 -0.22414, %v3871_v60  ;;  %v687_v62 = vrot.slane %v3954_v50, 7  ;;  %v701_v36 = vsel %vm696_vm1, %v698_v59, %v700_v51 }
  0x65   : > { %v820_v37 = vsel %vm696_vm1, %v817_v57, %v819_v13  ;;  %v667_v39 = vmul.f32 -0.12941, %v3964_v56  ;;  %v745_v53 = vadd.f32 %v699_v45, %v655_v25  ;;  %v642_v44 = vmul.f32 0.83652, %v489_v11 }
  0x66   : > { %v650_v12 = vmul.f32 -0.22414, %v505_v61  ;;  %v675_v3 = vmul.f32 -0.48296, %v3969_v52  ;;  %v705_v5 = vsel %vm696_vm1, %v702_v18, %v704_v23  ;;  %v846_v63 = vadd.f32 %v820_v37, %v773_v31 }
  0x67   : > { %v656_v26 = vadd.f32 %v648_v29, %v640_v22  ;;  %v638_v60 = vmul.f32 0.83652, %v3824_v33  ;;  %v646_v21 = vmul.f32 -0.22414, %v3785_v7  ;;  %v738_v13 = vsel %vm3860_vm2, %v701_v36, 0.0 }
  0x68   : > { %1132 = vrot.lane.b32.xlu1 %v848_v24, %s3559_s28  ;;  %v3985_v59 = vadd.f32 %v675_v3, %v667_v39  ;;  %v719_v61 = vsel %vm696_vm1, %v687_v62, %v697_v35  ;;  %v658_v11 = vadd.f32 %v650_v12, %v642_v44  ;;  %v740_v57 = vsel %vm3940_vm4, %v705_v5, 0.0  ;;  %v4014_v24 = vld [vmem:[%s3753_s9 + $0x30] sm:$0xff]  ;;  %v1257_v44 = vld [vmem:[#allocation10] sm:$0xff] }
  0x69   : > { %v746_v33 = vadd.f32 %v738_v13, %v656_v26  ;;  %v654_v32 = vadd.f32 %v646_v21, %v638_v60  ;;  %v643_v7 = vmul.f32 0.83652, %v3964_v56  ;;  %v651_v55 = vmul.f32 -0.22414, %v3969_v52 }
  0x6a   : > { %1070 = vrot.lane.b32.xlu0 %v745_v53, %s3559_s28  ;;  %v736_v20 = vsel %vm3798_vm0, %v719_v61, 0.0  ;;  %v706_v49 = vrot.slane %v3985_v59, 7  ;;  %v748_v35 = vadd.f32 %v740_v57, %v658_v11  ;;  %v641_v40 = vmul.f32 0.83652, %v3919_v0  ;;  %v1259_v0 = vld [vmem:[#allocation10 + $0x10] sm:$0x3] }
  0x6b   : > { %v744_v43 = vadd.f32 %v736_v20, %v654_v32  ;;  %v659_v14 = vadd.f32 %v651_v55, %v643_v7  ;;  %v649_v38 = vmul.f32 -0.22414, %v3909_v42  ;;  %v703_v25 = vsel %vm696_vm1, %v700_v51, %v702_v18  ;;  %v4011_v42 = vld [vmem:[%s3739_s19 + $0x30] sm:$0xff]  ;;  %v1258_v51 = vld [vmem:[#allocation10 + $0x8] sm:$0xff] }
  0x6c   : > { %1128 = vrot.lane.b32.xlu2 %v846_v63, %s3559_s28  ;;  %v707_v15 = vsel %vm696_vm1, %v704_v23, %v706_v49  ;;  %vm1285_vm5 = vcmask 1041408   ;;  %v668_v31 = vmul.f32 -0.12941, %v4011_v42  ;;  %v676_v22 = vmul.f32 -0.48296, %v4014_v24 }
  0x6d   : > { %v749_v17 = vadd.f32 %v707_v15, %v659_v14  ;;  %v657_v46 = vadd.f32 %v649_v38, %v641_v40  ;;  %v1287_v23 = vsel %vm1285_vm5, %v1259_v0, 0  ;;  %v4024_v37 = vand.u32 4294901760, %v1258_v51  ;;  %v1256_v32 = vld [vmem:[#allocation9 + $0x10] sm:$0x3] }
  0x6e   : > { %v4019_v29 = vand.u32 4294901760, %v1287_v23  ;;  %v684_v18 = vadd.f32 %v676_v22, %v668_v31  ;;  %v645_v39 = vmul.f32 0.83652, %v3827_v34  ;;  %v653_v53 = vmul.f32 -0.22414, %v3820_v30 }
  0x6f   : > { %v747_v45 = vadd.f32 %v703_v25, %v657_v46  ;;  %v4034_v5 = vsub.f32 %v1258_v51, %v4024_v37  ;;  %v4037_v63 = vand.u32 4294901760, %v1257_v44  ;;  %v1703_v7 = vsel %vm1285_vm5, %v1256_v32, 0 }
  0x70   : > { %1072 = vrot.lane.b32.xlu1 %v746_v33, %s3559_s28  ;;  %v4022_v36 = vsub.f32 %v1287_v23, %v4019_v29  ;;  %1514 = vmatpush.msra.mxu3 %v4019_v29  ;;  %v708_v12 = vrot.slane %v684_v18, 7  ;;  %v661_v26 = vadd.f32 %v653_v53, %v645_v39  ;;  %v4078_v55 = vand.u32 4294901760, %v1703_v7 }
  0x71   : > { %1303 = vmatpush.msra.mxu0 %v4019_v29  ;;  %v4047_v60 = vand.u32 4294901760, %v4034_v5  ;;  %v4050_v21 = vsub.f32 %v1257_v44, %v4037_v63  ;;  %v644_v20 = vmul.f32 0.83652, %v4011_v42  ;;  %vm1092_vm6 = vcmask 7168  }
  0x72   : > { %1076 = vrot.lane.b32.xlu0 %v748_v35, %s3559_s28  ;;  %v4031_v3 = vand.u32 4294901760, %v4022_v36  ;;  %1452 = vmatpush.msra.mxu2 %v4022_v36  ;;  %v710_v30 = vsel %vm696_vm1, %v708_v12, %v687_v62  ;;  %v652_v35 = vmul.f32 -0.22414, %v4014_v24  ;;  %v709_v14 = vsel %vm696_vm1, %v706_v49, %v708_v12 }
  0x73   : > { %1516 = vmatpush.msra.mxu3 %v4024_v37  ;;  %1305 = vmatpush.msra.mxu0 %v4024_v37  ;;  %5114 = vst [vmem:[#allocation20_spill] sm:$0xff] %v4047_v60  ;;  %v751_v13 = vadd.f32 %v710_v30, %v661_v26  ;;  %v1395_v50 = vsub.f32 %v4034_v5, %v4047_v60  ;;  %v4060_v62 = vand.u32 4294901760, %v4050_v21  ;;  %v742_v40 = vsel %vm3886_vm3, %v709_v14, 0.0 }
  0x74   : > { %1068 = vrot.lane.b32.xlu2 %v744_v43, %s3559_s28  ;;  %v1389_v34 = vsub.f32 %v4022_v36, %v4031_v3  ;;  %1455 = vmatpush.msra.mxu2 %v4034_v5  ;;  %v660_v43 = vadd.f32 %v652_v35, %v644_v20  ;;  %v4091_v38 = vsub.f32 %v1703_v7, %v4078_v55  ;;  %vm1101_vm7 = vcmask 138240  }
  0x75   : > { %1518 = vmatpush.msra.mxu3 %v4037_v63  ;;  %1307 = vmatpush.msra.mxu0 %v4037_v63  ;;  %5115 = vst [vmem:[#allocation21_spill] sm:$0xff] %v4060_v62  ;;  %v4066_v11 = vand.u32 4294901760, %v1395_v50  ;;  %v1401_v57 = vsub.f32 %v4050_v21, %v4060_v62  ;;  %vm1260_vm8 = vcmask 146432   ;;  %vm905_vm9 = vcmask 1046528  }
  0x76   : > { %v4055_v61 = vand.u32 4294901760, %v1389_v34  ;;  %1458 = vmatpush.msra.mxu2 %v4050_v21  ;;  %5116 = vst [vmem:[#allocation22_spill] sm:$0xff] %v4091_v38  ;;  %v750_v15 = vadd.f32 %v742_v40, %v660_v43  ;;  %vm2920_vm14 = vcmask 261120   ;;  %vm2961_vm15 = vcmask 523520  }
  0x77   : > { %1584 = vmatpush.msrb.mxu0 %v4031_v3  ;;  %v4072_v33 = vand.u32 4294901760, %v1401_v57 }
  0x78   : > { %1078 = vrot.lane.b32.xlu1 %v749_v17, %s3559_s28  ;;  %1391 = vmatpush.msra.mxu1 %v4055_v61  ;;  %v4094_v17 = vand.u32 4294901760, %v4091_v38 }
  0x79   : > { %1588 = vmatpush.msrb.mxu0 %v4047_v60  ;;  %1719 = vmatpush.msrb.mxu2 %v4078_v55 }
  0x7a   : > { %1082 = vrot.lane.b32.xlu0 %v751_v13, %s3559_s28  ;;  %1397 = vmatpush.msra.mxu1 %v4066_v11  ;;  %5117 = vst [vmem:[#allocation23_spill] sm:$0xff] %v4094_v17  ;;  %v1805_v46 = vsub.f32 %v4091_v38, %v4094_v17 }
  0x7b   : > { %1592 = vmatpush.msrb.mxu0 %v4060_v62 }
  0x7c   : > { %1074 = vrot.lane.b32.xlu2 %v747_v45, %s3559_s28  ;;  %1403 = vmatpush.msra.mxu1 %v4072_v33  ;;  %v4099_v25 = vand.u32 4294901760, %v1805_v46  ;;  %v1255_v45 = vld [vmem:[#allocation9 + $0x8] sm:$0xff] }
  0x7d   : > { %v4105_v23 = vand.u32 4294901760, %v1255_v45 }
  0x7e   : > { %1640 = vmatpush.msrb.mxu1 %v4019_v29  ;;  %1807 = vmatpush.msrb.mxu3 %v4099_v25 }
  0x7f   : > { %1721 = vmatpush.msrb.mxu2 %v4105_v23  ;;  %v4111_v22 = vsub.f32 %v1255_v45, %v4105_v23 }
  0x80   : > { %1642 = vmatpush.msrb.mxu1 %v4024_v37 }
  0x81   : > { %5118 = vst [vmem:[#allocation24_spill] sm:$0xff] %v4111_v22  ;;  %v4117_v53 = vand.u32 4294901760, %v4111_v22 }
  0x82   : > { %1644 = vmatpush.msrb.mxu1 %v4037_v63 }
  0x83   : > { %5119 = vst [vmem:[#allocation25_spill] sm:$0xff] %v4117_v53  ;;  %v1811_v13 = vsub.f32 %v4111_v22, %v4117_v53 }
  0x84   : > { %1080 = vrot.lane.b32.xlu2 %v750_v15, %s3559_s28 }
  0x85   : > { %v4128_v7 = vand.u32 4294901760, %v1811_v13 }
  0x87   : > { %1813 = vmatpush.msrb.mxu3 %v4128_v7 }
  0xbe   : > { %v1127_v14 = vpop.permute.xlu2 %1126 }
  0xc4   : > { %v1119_v10 = vpop.permute.xlu0 %1118 }
  0xc5   : > { %v1142_v59 = vsel %vm1092_vm6, 0.0, %v1119_v10 }
  0xc6   : > { %v1150_v49 = vsel %vm1101_vm7, %v1142_v59, 0.0 }
  0xc7   : > { %v1262_v0 = vsel %vm1260_vm8, %v1150_v49, 0 }
  0xc8   : > { %v4107_v31 = vand.u32 4294901760, %v1262_v0 }
  0xca   : > { %v1309_v51 = vsub.f32 %v1262_v0, %v4107_v31  ;;  %1405 = vmatmul.f32.vlgmr.msra.gmra.mxu1 %v4107_v31  ;;  %v1123_v18 = vpop.permute.xlu1 %1122 }
  0xcb   : > { %v1144_v39 = vsel %vm1092_vm6, 0.0, %v1123_v18  ;;  %1930 = vmatpush.msra.mxu1 %v4078_v55 }
  0xcc   : > { %1461 = vmatmul.f32.vlgmr.msra.gmra.mxu2 %v1309_v51  ;;  %v1121_v44 = vpop.permute.xlu0 %1120  ;;  %v1310_v12 = vand.u32 4294901760, %v1309_v51  ;;  %v1152_v26 = vsel %vm1101_vm7, %v1144_v39, 0.0 }
  0xcd   : > { %v1143_v30 = vsel %vm1092_vm6, 0.0, %v1121_v44  ;;  %v1268_v34 = vsel %vm1260_vm8, %v1152_v26, 0  ;;  %1932 = vmatpush.msra.mxu1 %v4105_v23  ;;  %v1254_v26 = vld [vmem:[#allocation9] sm:$0xff] }
  0xce   : > { %v1151_v50 = vsel %vm1101_vm7, %v1143_v30, 0.0  ;;  %1522 = vmatmul.f32.vlgmr.msra.gmra.mxu3 %v1310_v12  ;;  %v1311_v57 = vsub.f32 %v1309_v51, %v1310_v12  ;;  %v4132_v35 = vand.u32 4294901760, %v1268_v34  ;;  %v1146_v51 = vsel %vm1092_vm6, 0.0, %v1127_v14  ;;  %v1129_v30 = vpop.permute.xlu2 %1128 }
  0xcf   : > { %v1265_v32 = vsel %vm1260_vm8, %v1151_v50, 0  ;;  %v1154_v12 = vsel %vm1101_vm7, %v1146_v51, 0.0 }
  0xd0   : > { %v4130_v20 = vand.u32 4294901760, %v1265_v32  ;;  %v1312_v43 = vand.u32 4294901760, %v1311_v57  ;;  %v1325_v10 = vsub.f32 %v1268_v34, %v4132_v35  ;;  %v4148_v34 = vand.u32 4294901760, %v1254_v26 }
  0xd1   : > { %v1274_v50 = vsel %vm1260_vm8, %v1154_v12, 0  ;;  %v988_v12 = vmul.f32 0.48296, %v3796_v16 }
  0xd2   : > { %v1317_v40 = vsub.f32 %v1265_v32, %v4130_v20  ;;  %1313 = vmatmul.f32.vlgmr.msra.gmra.mxu0 %v1312_v43  ;;  %1409 = vmatmul.f32.gmra.mxu1 %v4130_v20  ;;  %v1125_v15 = vpop.permute.xlu1 %1124  ;;  %v1326_v44 = vand.u32 4294901760, %v1325_v10  ;;  %v4154_v32 = vsub.f32 %v1254_v26, %v4148_v34  ;;  %v1147_v43 = vsel %vm1092_vm6, 0.0, %v1129_v30 }
  0xd3   : > { %v1145_v46 = vsel %vm1092_vm6, 0.0, %v1125_v15  ;;  %1868 = vmatpush.msra.mxu0 %v4091_v38  ;;  %1723 = vmatpush.msrb.mxu2 %v4148_v34  ;;  %v4159_v14 = vand.u32 4294901760, %v1274_v50  ;;  %v995_v26 = vmul.f32 -0.12941, %v3778_v4 }
  0xd4   : > { %1466 = vmatmul.f32.gmra.mxu2 %v1317_v40  ;;  %v1318_v59 = vand.u32 4294901760, %v1317_v40  ;;  %v1153_v49 = vsel %vm1101_vm7, %v1145_v46, 0.0  ;;  %v1327_v57 = vsub.f32 %v1325_v10, %v1326_v44  ;;  %5120 = vst [vmem:[#allocation26_spill] sm:$0xff] %v4154_v32  ;;  %1934 = vmatpush.msra.mxu1 %v4148_v34 }
  0xd5   : > { %v1271_v45 = vsel %vm1260_vm8, %v1153_v49, 0  ;;  %1871 = vmatpush.msra.mxu0 %v4111_v22  ;;  %2000 = vmatpush.msra.mxu2 %v4094_v17  ;;  %v1341_v49 = vsub.f32 %v1274_v50, %v4159_v14  ;;  %v996_v50 = vmul.f32 -0.12941, %v3803_v19 }
  0xd6   : > { %1528 = vmatmul.f32.gmra.mxu3 %v1318_v59  ;;  %v1319_v0 = vsub.f32 %v1317_v40, %v1318_v59  ;;  %v4144_v18 = vand.u32 4294901760, %v1271_v45  ;;  %v4162_v40 = vand.u32 4294901760, %v4154_v32  ;;  %v1328_v15 = vand.u32 4294901760, %v1327_v57 }
  0xd7   : > { %1874 = vmatpush.msra.mxu0 %v4154_v32  ;;  %2004 = vmatpush.msra.mxu2 %v4117_v53  ;;  %v1342_v57 = vand.u32 4294901760, %v1341_v49  ;;  %v4189_v22 = vadd.f32 %v996_v50, %v988_v12 }
  0xd8   : > { %v1320_v39 = vand.u32 4294901760, %v1319_v0  ;;  %v1333_v13 = vsub.f32 %v1271_v45, %v4144_v18  ;;  %5121 = vst [vmem:[#allocation27_spill] sm:$0xff] %v4162_v40  ;;  %v1817_v59 = vsub.f32 %v4154_v32, %v4162_v40  ;;  %v1131_v45 = vpop.permute.xlu0 %1130 }
  0xd9   : > { %2008 = vmatpush.msra.mxu2 %v4162_v40  ;;  %v1148_v30 = vsel %vm1092_vm6, 0.0, %v1131_v45  ;;  %v1343_v12 = vsub.f32 %v1341_v49, %v1342_v57  ;;  %v973_v40 = vmul.f32 0.83652, %v3817_v28 }
  0xda   : > { %1321 = vmatmul.f32.gmra.mxu0 %v1320_v39  ;;  %1413 = vmatmul.f32.gmra.mxu1 %v4132_v35  ;;  %v1334_v46 = vand.u32 4294901760, %v1333_v13  ;;  %v4171_v0 = vand.u32 4294901760, %v1817_v59  ;;  %v971_v59 = vmul.f32 0.83652, %v3778_v4  ;;  %v1156_v32 = vsel %vm1101_vm7, %v1148_v30, 0.0 }
  0xdb   : > { %v1280_v4 = vsel %vm1260_vm8, %v1156_v32, 0  ;;  %v1344_v38 = vand.u32 4294901760, %v1343_v12  ;;  %v989_v12 = vmul.f32 0.48296, %v3814_v27 }
  0xdc   : > { %1471 = vmatmul.f32.gmra.mxu2 %v1325_v10  ;;  %v1155_v10 = vsel %vm1101_vm7, %v1147_v43, 0.0  ;;  %v1335_v39 = vsub.f32 %v1333_v13, %v1334_v46  ;;  %1819 = vmatpush.msrb.mxu3 %v4171_v0 }
  0xdd   : > { %v1277_v51 = vsel %vm1260_vm8, %v1155_v10, 0  ;;  %v963_v10 = vmul.f32 0.22414, %v3772_v2 }
  0xde   : > { %1534 = vmatmul.f32.gmra.mxu3 %v1326_v44  ;;  %v987_v44 = vmul.f32 0.48296, %v3772_v2 }
  0xdf   : > { %2056 = vmatpush.msra.mxu3 %v4078_v55  ;;  %v979_v45 = vadd.f32 %v971_v59, %v963_v10  ;;  %v4205_v59 = vand.u32 4294901760, %v1280_v4 }
  0xe0   : > { %v4181_v43 = vadd.f32 %v995_v26, %v987_v44  ;;  %v1133_v44 = vpop.permute.xlu1 %1132  ;;  %v1069_v26 = vpop.permute.xlu2 %1068 }
  0xe1   : > { %2058 = vmatpush.msra.mxu3 %v4105_v23  ;;  %v1149_v50 = vsel %vm1092_vm6, 0.0, %v1133_v44 }
  0xe2   : > { %1329 = vmatmul.f32.gmra.mxu0 %v1328_v15  ;;  %1417 = vmatmul.f32.gmra.mxu1 %v4144_v18  ;;  %v4184_v15 = vand.u32 4294901760, %v1277_v51  ;;  %v1157_v32 = vsel %vm1101_vm7, %v1149_v50, 0.0  ;;  %v997_v50 = vmul.f32 -0.12941, %v3817_v28  ;;  %v991_v28 = vmul.f32 0.48296, %v3906_v41 }
  0xe3   : > { %2060 = vmatpush.msra.mxu3 %v4148_v34  ;;  %v1283_v44 = vsel %vm1260_vm8, %v1157_v32, 0 }
  0xe4   : > { %1476 = vmatmul.f32.gmra.mxu2 %v1333_v13  ;;  %v1336_v13 = vand.u32 4294901760, %v1335_v39  ;;  %v5070_v39 = vrot.slane %v4189_v22, 1  ;;  %v1349_v2 = vsub.f32 %v1277_v51, %v4184_v15 }
  0xe6   : > { %1540 = vmatmul.f32.gmra.mxu3 %v1334_v46  ;;  %v5069_v46 = vrot.slane %v4181_v43, 1  ;;  %v1350_v51 = vand.u32 4294901760, %v1349_v2 }
  0xe8   : > { %v1021_v30 = vsel %vm905_vm9, %v5069_v46, %v5070_v39  ;;  %v1071_v46 = vpop.permute.xlu0 %1070  ;;  %v4221_v39 = vadd.f32 %v997_v50, %v989_v12  ;;  %v1073_v50 = vpop.permute.xlu1 %1072 }
  0xe9   : > { %v1052_v10 = vadd.f32 %v1021_v30, %v979_v45  ;;  %v1351_v45 = vsub.f32 %v1349_v2, %v1350_v51  ;;  %v990_v30 = vmul.f32 0.48296, %v3850_v48 }
  0xea   : > { %1337 = vmatmul.f32.gmra.mxu0 %v1336_v13  ;;  %1421 = vmatmul.f32.gmra.mxu1 %v4159_v14  ;;  %v1093_v13 = vsel %vm1092_vm6, 0.0, %v1069_v26 }
  0xeb   : > { %1214 = vrot.lane.b32.xlu1 %v1052_v10, %s3559_s28  ;;  %v4219_v10 = vand.u32 4294901760, %v1283_v44  ;;  %v1352_v32 = vand.u32 4294901760, %v1351_v45 }
  0xec   : > { %1481 = vmatmul.f32.gmra.mxu2 %v1341_v49  ;;  %v1102_v49 = vsel %vm1101_vm7, %v1093_v13, 0.0  ;;  %v998_v13 = vmul.f32 -0.12941, %v3858_v54 }
  0xed   : > { %v1679_v26 = vsel %vm1260_vm8, %v1102_v49, 0  ;;  %v965_v49 = vmul.f32 0.22414, %v3814_v27  ;;  %v1365_v62 = vsub.f32 %v1283_v44, %v4219_v10  ;;  %v521_v44 = vadd.s32 24, %v3769_v1 }
  0xee   : > { %1546 = vmatmul.f32.gmra.mxu3 %v1342_v57  ;;  %v1357_v57 = vsub.f32 %v1280_v4, %v4205_v59  ;;  %v1006_v17 = vadd.f32 %v998_v13, %v990_v30  ;;  %v999_v30 = vmul.f32 -0.12941, %v3914_v47 }
  0xf0   : > { %v1358_v4 = vand.u32 4294901760, %v1357_v57  ;;  %v1024_v45 = vrot.slane %v1006_v17, 1 }
  0xf2   : > { %1345 = vmatmul.f32.gmra.mxu0 %v1344_v38  ;;  %1425 = vmatmul.f32.gmra.mxu1 %v4184_v15  ;;  %v1094_v38 = vsel %vm1092_vm6, 0.0, %v1071_v46  ;;  %v981_v46 = vadd.f32 %v973_v40, %v965_v49  ;;  %v1359_v12 = vsub.f32 %v1357_v57, %v1358_v4  ;;  %v1095_v40 = vsel %vm1092_vm6, 0.0, %v1073_v50 }
  0xf3   : > { %v1103_v53 = vsel %vm1101_vm7, %v1094_v38, 0.0  ;;  %v966_v49 = vmul.f32 0.22414, %v3850_v48  ;;  %v974_v50 = vmul.f32 0.83652, %v3858_v54 }
  0xf4   : > { %1486 = vmatmul.f32.gmra.mxu2 %v1349_v2  ;;  %v4223_v2 = vand.u32 4294901760, %v1679_v26  ;;  %v1682_v27 = vsel %vm1260_vm8, %v1103_v53, 0  ;;  %v1360_v13 = vand.u32 4294901760, %v1359_v12 }
  0xf5   : > { %v4240_v17 = vand.u32 4294901760, %v1682_v27 }
  0xf6   : > { %1552 = vmatmul.f32.gmra.mxu3 %v1350_v51  ;;  %v1022_v51 = vrot.slane %v4221_v39, 1  ;;  %v4232_v60 = vsub.f32 %v1679_v26, %v4223_v2  ;;  %v1366_v26 = vand.u32 4294901760, %v1365_v62 }
  0xf8   : > { %v1025_v39 = vsel %vm905_vm9, %v1022_v51, %v1024_v45  ;;  %v5076_v53 = vand.u32 4294901760, %v4232_v60  ;;  %v5133_v12 = vand.u32 4294901760, %v4232_v60 }
  0xf9   : > { %v1054_v38 = vadd.f32 %v1025_v39, %v981_v46  ;;  %v1367_v39 = vsub.f32 %v1365_v62, %v1366_v26 }
  0xfa   : > { %1353 = vmatmul.f32.gmra.mxu0 %v1352_v32  ;;  %1429 = vmatmul.f32.gmra.mxu1 %v4205_v59  ;;  %v551_v32 = vand.u32 15, %v521_v44  ;;  %v1727_v54 = vsub.f32 %v4232_v60, %v5076_v53 }
  0xfb   : > { %1218 = vrot.lane.b32.xlu0 %v1054_v38, %s3559_s28  ;;  %v1075_v38 = vpop.permute.xlu2 %1074 }
  0xfc   : > { %1491 = vmatmul.f32.gmra.mxu2 %v1357_v57  ;;  %v4242_v57 = vadd.f32 %v999_v30, %v991_v28  ;;  %vm4251_vm10 = vcmp.ne.s32.totalorder %v551_v32, 15  ;;  %v4256_v28 = vsub.f32 %v1682_v27, %v4240_v17  ;;  %v982_v30 = vadd.f32 %v974_v50, %v966_v49 }
  0xfd   : > { %v519_v27 = vadd.s32 8, %v3769_v1  ;;  %v1368_v49 = vand.u32 4294901760, %v1367_v39  ;;  %v1728_v50 = vand.u32 4294901760, %v1727_v54 }
  0xfe   : > { %1558 = vmatmul.f32.gmra.mxu3 %v1358_v4  ;;  %v1104_v4 = vsel %vm1101_vm7, %v1095_v40, 0.0  ;;  %v5077_v46 = vrot.slane %v4242_v57, 1 }
  0xff   : > { %v1685_v40 = vsel %vm1260_vm8, %v1104_v4, 0  ;;  %v537_v53 = vand.u32 15, %v519_v27  ;;  %v964_v4 = vmul.f32 0.22414, %v3796_v16 }
 0x100   : > { %v1027_v48 = vsel %vm905_vm9, %v1024_v45, %v5077_v46  ;;  %v4268_v32 = vand.u32 4294901760, %v1685_v40  ;;  %v1734_v45 = vand.u32 4294901760, %v4256_v28  ;;  %v972_v46 = vmul.f32 0.83652, %v3803_v19 }
 0x101   : > { %v1047_v44 = vsel %vm4251_vm10, %v1027_v48, 0.0  ;;  %vm4277_vm11 = vcmp.ne.s32.totalorder %v537_v53, 15  ;;  %v992_v53 = vmul.f32 0.48296, %v3867_v58 }
 0x102   : > { %1361 = vmatmul.f32.gmra.mxu0 %v1360_v13  ;;  %1433 = vmatmul.f32.gmra.mxu1 %v4219_v10  ;;  %v1055_v13 = vadd.f32 %v1047_v44, %v982_v30  ;;  %v1077_v30 = vpop.permute.xlu0 %1076  ;;  %v4285_v54 = vsub.f32 %v1685_v40, %v4268_v32  ;;  %v1735_v16 = vsub.f32 %v4256_v28, %v1734_v45 }
 0x103   : > { %v980_v19 = vadd.f32 %v972_v46, %v964_v4 }
 0x104   : > { %1496 = vmatmul.f32.gmra.mxu2 %v1365_v62  ;;  %v1096_v62 = vsel %vm1092_vm6, 0.0, %v1075_v38  ;;  %1220 = vrot.lane.b32.xlu1 %v1055_v13, %s3559_s28  ;;  %v5126_v38 = vrot.slane %v4189_v22, 1  ;;  %v993_v22 = vmul.f32 0.48296, %v3878_v6  ;;  %v1097_v13 = vsel %vm1092_vm6, 0.0, %v1077_v30 }
 0x106   : > { %1564 = vmatmul.f32.gmra.mxu3 %v1366_v26  ;;  %v1105_v26 = vsel %vm1101_vm7, %v1096_v62, 0.0  ;;  %v1023_v39 = vsel %vm905_vm9, %v5126_v38, %v1022_v51  ;;  %v1000_v51 = vmul.f32 -0.12941, %v3881_v8  ;;  %v1001_v62 = vmul.f32 -0.12941, %v3884_v9 }
 0x107   : > { %v1045_v44 = vsel %vm4277_vm11, %v1023_v39, 0.0  ;;  %v1688_v40 = vsel %vm1260_vm8, %v1105_v26, 0  ;;  %v976_v38 = vmul.f32 0.83652, %v3881_v8 }
 0x108   : > { %v1053_v27 = vadd.f32 %v1045_v44, %v980_v19  ;;  %v4303_v46 = vadd.f32 %v1000_v51, %v992_v53  ;;  %v1009_v4 = vadd.f32 %v1001_v62, %v993_v22  ;;  %v4308_v26 = vand.u32 4294901760, %v1688_v40  ;;  %v1079_v44 = vpop.permute.xlu1 %1078  ;;  %v4337_v51 = vld [vmem:[%s3747_s8 + $0x38] sm:$0xff] }
 0x109   : > { %v1098_v62 = vsel %vm1092_vm6, 0.0, %v1079_v44 }
 0x10a   : > { %1369 = vmatmul.f32.gmra.mxu0 %v1368_v49  ;;  %1646 = vmatmul.f32.vlgmr.msrb.gmra.mxu1 %v4107_v31  ;;  %v1736_v49 = vand.u32 4294901760, %v1735_v16  ;;  %v1028_v39 = vrot.slane %v4303_v46, 1  ;;  %v1030_v16 = vrot.slane %v1009_v4, 1  ;;  %v969_v4 = vmul.f32 0.22414, %v3878_v6 }
 0x10b   : > { %2220 = vmatpush.msrb.mxu1 %v4055_v61  ;;  %v523_v61 = vadd.s32 40, %v3769_v1  ;;  %1216 = vrot.lane.b32.xlu2 %v1053_v27, %s3559_s28 }
 0x10c   : > { %1729 = vmatmul.f32.vlgmr.msrb.gmra.mxu2 %v1728_v50  ;;  %v1742_v50 = vand.u32 4294901760, %v4285_v54  ;;  %v1031_v8 = vsel %vm905_vm9, %v1028_v39, %v1030_v16 }
 0x10d   : > { %2281 = vmatpush.msrb.mxu2 %v4022_v36  ;;  %2226 = vmatpush.msrb.mxu1 %v4066_v11  ;;  %v1106_v36 = vsel %vm1101_vm7, %v1097_v13, 0.0  ;;  %v565_v30 = vand.u32 15, %v523_v61  ;;  %v968_v11 = vmul.f32 0.22414, %v3867_v58  ;;  %v994_v13 = vmul.f32 0.48296, %v4337_v51 }
 0x10e   : > { %1821 = vmatmul.f32.vlgmr.msrb.gmra.mxu3 %v4223_v2  ;;  %v1691_v58 = vsel %vm1260_vm8, %v1106_v36, 0  ;;  %v977_v36 = vmul.f32 0.83652, %v3884_v9  ;;  %v1081_v9 = vpop.permute.xlu2 %1080 }
 0x10f   : > { %2343 = vmatpush.msrb.mxu3 %v4019_v29  ;;  %2284 = vmatpush.msrb.mxu2 %v4034_v5  ;;  %vm4319_vm12 = vcmp.ne.s32.totalorder %v565_v30, 15  ;;  %v984_v5 = vadd.f32 %v976_v38, %v968_v11  ;;  %v4346_v27 = vand.u32 4294901760, %v1691_v58  ;;  %v1107_v38 = vsel %vm1101_vm7, %v1098_v62, 0.0 }
 0x110   : > { %2232 = vmatpush.msrb.mxu1 %v4072_v33  ;;  %v4328_v33 = vsub.f32 %v1688_v40, %v4308_v26  ;;  %v1049_v53 = vsel %vm4319_vm12, %v1031_v8, 0.0 }
 0x111   : > { %2345 = vmatpush.msrb.mxu3 %v4024_v37  ;;  %2287 = vmatpush.msrb.mxu2 %v4050_v21  ;;  %v1057_v22 = vadd.f32 %v1049_v53, %v984_v5  ;;  %v4341_v21 = vld [vmem:[%s3755_s13 + $0x38] sm:$0xff]  ;;  %v4360_v11 = vsub.f32 %v1691_v58, %v4346_v27  ;;  %v985_v5 = vadd.f32 %v977_v36, %v969_v4  ;;  %v5129_v4 = vrot.slane %v4242_v57, 1 }
 0x112   : > { %1594 = vmatmul.f32.vlgmr.msrb.gmra.mxu0 %v4107_v31  ;;  %1650 = vmatmul.f32.gmra.mxu1 %v4130_v20  ;;  %v1743_v31 = vsub.f32 %v4285_v54, %v1742_v50  ;;  %v1002_v40 = vmul.f32 -0.12941, %v4341_v21 }
 0x113   : > { %2132 = vmatpush.msrb.mxu0 %v4019_v29  ;;  %2347 = vmatpush.msrb.mxu3 %v4037_v63  ;;  %v5078_v58 = vand.u32 4294901760, %v4360_v11  ;;  %v1029_v36 = vsel %vm905_vm9, %v5129_v4, %v1028_v39 }
 0x114   : > { %1737 = vmatmul.f32.gmra.mxu2 %v1736_v49  ;;  %1224 = vrot.lane.b32.xlu0 %v1057_v22, %s3559_s28  ;;  %v4350_v61 = vadd.f32 %v1002_v40, %v994_v13  ;;  %v1744_v46 = vand.u32 4294901760, %v1743_v31  ;;  %v5079_v49 = vand.u32 4294901760, %v4328_v33  ;;  %v967_v22 = vmul.f32 0.22414, %v3906_v41 }
 0x115   : > { %2134 = vmatpush.msrb.mxu0 %v4024_v37  ;;  %v975_v13 = vmul.f32 0.83652, %v3914_v47  ;;  %v1759_v40 = vsub.f32 %v4360_v11, %v5078_v58  ;;  %v3296_v58 = vld [vmem:[%s3753_s9 + $0x8] sm:$0xff] }
 0x116   : > { %1825 = vmatmul.f32.gmra.mxu3 %v4240_v17  ;;  %v1032_v30 = vrot.slane %v4350_v61, 1  ;;  %v1751_v6 = vsub.f32 %v4328_v33, %v5079_v49  ;;  %v882_v49 = vmul.f32 -0.12941, %v3296_v58 }
 0x117   : > { %2136 = vmatpush.msrb.mxu0 %v4037_v63 }
 0x118   : > { %v1033_v8 = vsel %vm905_vm9, %v1030_v16, %v1032_v30  ;;  %v1099_v16 = vsel %vm1092_vm6, 0.0, %v1081_v9  ;;  %v1752_v44 = vand.u32 4294901760, %v1751_v6  ;;  %v1083_v9 = vpop.permute.xlu0 %1082 }
 0x119   : > { %v1058_v31 = vadd.f32 %v1033_v8, %v985_v5  ;;  %v1108_v62 = vsel %vm1101_vm7, %v1099_v16, 0.0  ;;  %v3294_v5 = vld [vmem:[%s3739_s19 + $0x8] sm:$0xff]  ;;  %v3295_v8 = vld [vmem:[%s3753_s9] sm:$0xff] }
 0x11a   : > { %1598 = vmatmul.f32.gmra.mxu0 %v4130_v20  ;;  %1654 = vmatmul.f32.gmra.mxu1 %v4132_v35  ;;  %v1694_v20 = vsel %vm1260_vm8, %v1107_v38, 0  ;;  %v3293_v38 = vld [vmem:[%s3739_s19] sm:$0xff]  ;;  %v874_v47 = vmul.f32 0.48296, %v3294_v5  ;;  %v1697_v16 = vsel %vm1260_vm8, %v1108_v62, 0 }
 0x11b   : > { %1226 = vrot.lane.b32.xlu1 %v1058_v31, %s3559_s28  ;;  %v4374_v53 = vand.u32 4294901760, %v1694_v20  ;;  %v873_v41 = vmul.f32 0.48296, %v3293_v38  ;;  %v849_v57 = vmul.f32 0.22414, %v3293_v38  ;;  %v4401_v4 = vand.u32 4294901760, %v1697_v16 }
 0x11c   : > { %1745 = vmatmul.f32.gmra.mxu2 %v1744_v46  ;;  %v983_v46 = vadd.f32 %v975_v13, %v967_v22  ;;  %v857_v39 = vmul.f32 0.83652, %v3295_v8  ;;  %v1760_v13 = vand.u32 4294901760, %v1759_v40 }
 0x11d   : > { %v4391_v6 = vsub.f32 %v1694_v20, %v4374_v53  ;;  %v1100_v20 = vsel %vm1092_vm6, 0.0, %v1083_v9 }
 0x11e   : > { %1829 = vmatmul.f32.gmra.mxu3 %v4268_v32  ;;  %v1056_v31 = vadd.f32 %v1029_v36, %v983_v46  ;;  %v865_v36 = vadd.f32 %v857_v39, %v849_v57  ;;  %v1109_v38 = vsel %vm1101_vm7, %v1100_v20, 0.0  ;;  %v858_v20 = vmul.f32 0.83652, %v3296_v58 }
 0x11f   : > { %v1766_v62 = vand.u32 4294901760, %v4391_v6  ;;  %v1700_v57 = vsel %vm1260_vm8, %v1109_v38, 0 }
 0x120   : > { %1222 = vrot.lane.b32.xlu2 %v1056_v31, %s3559_s28 }
 0x121   : > { %v1767_v31 = vsub.f32 %v4391_v6, %v1766_v62 }
 0x122   : > { %1602 = vmatmul.f32.gmra.mxu0 %v4132_v35  ;;  %1658 = vmatmul.f32.gmra.mxu1 %v4144_v18  ;;  %v881_v35 = vmul.f32 -0.12941, %v3295_v8 }
 0x124   : > { %1753 = vmatmul.f32.gmra.mxu2 %v1752_v44  ;;  %v4395_v22 = vadd.f32 %v881_v35, %v873_v41  ;;  %v890_v44 = vadd.f32 %v882_v49, %v874_v47  ;;  %v4411_v47 = vld [vmem:[%s3739_s19 + $0x10] sm:$0xff] }
 0x125   : > { %v875_v8 = vmul.f32 0.48296, %v4411_v47  ;;  %v4415_v35 = vld [vmem:[%s3753_s9 + $0x10] sm:$0xff] }
 0x126   : > { %1833 = vmatmul.f32.gmra.mxu3 %v4308_v26  ;;  %v5080_v46 = vrot.slane %v4395_v22, 1  ;;  %v907_v41 = vrot.slane %v890_v44, 1  ;;  %v883_v9 = vmul.f32 -0.12941, %v4415_v35  ;;  %v850_v44 = vmul.f32 0.22414, %v3294_v5 }
 0x128   : > { %v908_v49 = vsel %vm905_vm9, %v5080_v46, %v907_v41  ;;  %v4426_v39 = vadd.f32 %v883_v9, %v875_v8  ;;  %v866_v46 = vadd.f32 %v858_v20, %v850_v44  ;;  %v970_v9 = vmul.f32 0.22414, %v4337_v51 }
 0x129   : > { %v955_v40 = vadd.f32 %v908_v49, %v865_v36  ;;  %v4430_v49 = vand.u32 4294901760, %v1700_v57  ;;  %v5132_v44 = vrot.slane %v4181_v43, 1  ;;  %v3302_v43 = vld [vmem:[%s3753_s9 + $0x20] sm:$0xff] }
 0x12a   : > { %1606 = vmatmul.f32.gmra.mxu0 %v4144_v18  ;;  %1662 = vmatmul.f32.gmra.mxu1 %v4159_v14  ;;  %v4419_v18 = vsub.f32 %v1697_v16, %v4401_v4  ;;  %v909_v36 = vrot.slane %v4426_v39, 1 }
 0x12b   : > { %1166 = vrot.lane.b32.xlu0 %v955_v40, %s3559_s28  ;;  %v4441_v40 = vsub.f32 %v1700_v57, %v4430_v49  ;;  %v1043_v20 = vsel %vm905_vm9, %v1032_v30, %v5132_v44 }
 0x12c   : > { %1761 = vmatmul.f32.gmra.mxu2 %v1760_v13  ;;  %v1768_v13 = vand.u32 4294901760, %v1767_v31  ;;  %v5082_v16 = vand.u32 4294901760, %v4419_v18  ;;  %v910_v38 = vsel %vm905_vm9, %v907_v41, %v909_v36  ;;  %v978_v31 = vmul.f32 0.83652, %v4341_v21 }
 0x12d   : > { %v948_v5 = vsel %vm4277_vm11, %v910_v38, 0.0  ;;  %v5081_v48 = vand.u32 4294901760, %v4441_v40  ;;  %v3300_v38 = vld [vmem:[%s3739_s19 + $0x20] sm:$0xff] }
 0x12e   : > { %1837 = vmatmul.f32.gmra.mxu3 %v4346_v27  ;;  %v956_v58 = vadd.f32 %v948_v5, %v866_v46  ;;  %v1775_v8 = vsub.f32 %v4419_v18, %v5082_v16  ;;  %v877_v5 = vmul.f32 0.48296, %v3300_v38 }
 0x130   : > { %1168 = vrot.lane.b32.xlu1 %v956_v58, %s3559_s28  ;;  %v1776_v41 = vand.u32 4294901760, %v1775_v8  ;;  %v3301_v58 = vld [vmem:[%s3753_s9 + $0x18] sm:$0xff] }
 0x131   : > { %v884_v8 = vmul.f32 -0.12941, %v3301_v58 }
 0x132   : > { %1610 = vmatmul.f32.gmra.mxu0 %v4159_v14  ;;  %1666 = vmatmul.f32.gmra.mxu1 %v4184_v15  ;;  %v525_v14 = vadd.s32 56, %v3769_v1  ;;  %v986_v1 = vadd.f32 %v978_v31, %v970_v9 }
 0x134   : > { %1769 = vmatmul.f32.gmra.mxu2 %v1768_v13  ;;  %v579_v46 = vand.u32 15, %v525_v14  ;;  %v3299_v13 = vld [vmem:[%s3739_s19 + $0x18] sm:$0xff] }
 0x135   : > { %v876_v51 = vmul.f32 0.48296, %v3299_v13  ;;  %v852_v30 = vmul.f32 0.22414, %v3299_v13  ;;  %v886_v13 = vmul.f32 -0.12941, %v3969_v52 }
 0x136   : > { %1841 = vmatmul.f32.gmra.mxu3 %v4374_v53  ;;  %vm4454_vm13 = vcmp.ne.s32.totalorder %v579_v46, 15  ;;  %v885_v46 = vmul.f32 -0.12941, %v3302_v43 }
 0x137   : > { %v1051_v21 = vsel %vm4454_vm13, %v1043_v20, 0.0  ;;  %v892_v61 = vadd.f32 %v884_v8, %v876_v51  ;;  %v878_v51 = vmul.f32 0.48296, %v3964_v56 }
 0x138   : > { %v1059_v14 = vadd.f32 %v1051_v21, %v986_v1  ;;  %v893_v9 = vadd.f32 %v885_v46, %v877_v5 }
 0x139   : > { %v911_v44 = vrot.slane %v892_v61, 1 }
 0x13a   : > { %1614 = vmatmul.f32.gmra.mxu0 %v4184_v15  ;;  %1670 = vmatmul.f32.gmra.mxu1 %v4205_v59  ;;  %v1783_v15 = vsub.f32 %v4441_v40, %v5081_v48  ;;  %v913_v16 = vrot.slane %v893_v9, 1  ;;  %v863_v9 = vmul.f32 0.83652, %v4014_v24 }
 0x13b   : > { %1228 = vrot.lane.b32.xlu2 %v1059_v14, %s3559_s28 }
 0x13c   : > { %1777 = vmatmul.f32.gmra.mxu2 %v1776_v41  ;;  %v860_v41 = vmul.f32 0.83652, %v3301_v58  ;;  %v1784_v31 = vand.u32 4294901760, %v1783_v15  ;;  %v914_v1 = vsel %vm905_vm9, %v911_v44, %v913_v16  ;;  %v4482_v15 = vadd.f32 %v886_v13, %v878_v51 }
 0x13d   : > { %v950_v20 = vsel %vm4251_vm10, %v914_v1, 0.0  ;;  %v861_v58 = vmul.f32 0.83652, %v3302_v43  ;;  %v859_v43 = vmul.f32 0.83652, %v4415_v35 }
 0x13e   : > { %1845 = vmatmul.f32.gmra.mxu3 %v4401_v4  ;;  %v868_v48 = vadd.f32 %v860_v41, %v852_v30  ;;  %v915_v8 = vrot.slane %v4482_v15, 1  ;;  %v887_v35 = vmul.f32 -0.12941, %v4014_v24  ;;  %v855_v41 = vmul.f32 0.22414, %v4011_v42 }
 0x140   : > { %v958_v21 = vadd.f32 %v950_v20, %v868_v48  ;;  %v916_v56 = vsel %vm905_vm9, %v913_v16, %v915_v8 }
 0x142   : > { %1618 = vmatmul.f32.gmra.mxu0 %v4205_v59  ;;  %1674 = vmatmul.f32.gmra.mxu1 %v4219_v10  ;;  %v853_v59 = vmul.f32 0.22414, %v3300_v38  ;;  %v851_v38 = vmul.f32 0.22414, %v4411_v47  ;;  %v3303_v47 = vld [vmem:[%s3739_s19 + $0x38] sm:$0xff] }
 0x143   : > { %1172 = vrot.lane.b32.xlu0 %v958_v21, %s3559_s28  ;;  %v871_v21 = vadd.f32 %v863_v9, %v855_v41 }
 0x144   : > { %1785 = vmatmul.f32.gmra.mxu2 %v1784_v31  ;;  %v869_v14 = vadd.f32 %v861_v58, %v853_v59  ;;  %v867_v61 = vadd.f32 %v859_v43, %v851_v38 }
 0x146   : > { %1849 = vmatmul.f32.gmra.mxu3 %v4430_v49  ;;  %v959_v52 = vadd.f32 %v916_v56, %v869_v14 }
 0x147   : > { %v1406_v5 = vpop.f32.mrf.mxu1 }
 0x148   : > { %1174 = vrot.lane.b32.xlu1 %v959_v52, %s3559_s28 }
 0x14a   : > { %1622 = vmatmul.f32.gmra.mxu0 %v4219_v10  ;;  %1938 = vmatmul.f32.vlgmr.msra.gmra.mxu1 %v5133_v12  ;;  %v856_v12 = vmul.f32 0.22414, %v3303_v47 }
 0x14b   : > { %2469 = vmatpush.msra.mxu1 %v4019_v29 }
 0x14c   : > { %2010 = vmatmul.f32.vlgmr.msra.gmra.mxu2 %v4223_v2 }
 0x14d   : > { %2545 = vmatpush.msra.mxu2 %v4078_v55  ;;  %2471 = vmatpush.msra.mxu1 %v4024_v37 }
 0x14e   : > { %2062 = vmatmul.f32.vlgmr.msra.gmra.mxu3 %v4223_v2 }
 0x14f   : > { %v1314_v10 = vpop.f32.mrf.mxu0  ;;  %v1410_v48 = vpop.f32.mrf.mxu1  ;;  %2633 = vmatpush.msra.mxu3 %v4099_v25  ;;  %2547 = vmatpush.msra.mxu2 %v4105_v23  ;;  %v912_v25 = vsel %vm905_vm9, %v909_v36, %v911_v44  ;;  %v5134_v36 = vld [vmem:[#allocation20_spill] sm:$0xff]  ;;  %v5135_v44 = vld [vmem:[#allocation21_spill] sm:$0xff] }
 0x150   : > { %v1407_v29 = vadd.f32 %v1406_v5, %v1314_v10  ;;  %v1462_v16 = vpop.f32.mrf.mxu2  ;;  %2473 = vmatpush.msra.mxu1 %v4037_v63  ;;  %v957_v2 = vadd.f32 %v912_v25, %v867_v61 }
 0x151   : > { %v1523_v46 = vpop.f32.mrf.mxu3  ;;  %2639 = vmatpush.msra.mxu3 %v4128_v7  ;;  %2549 = vmatpush.msra.mxu2 %v4148_v34  ;;  %v879_v7 = vmul.f32 0.48296, %v4011_v42 }
 0x152   : > { %v1463_v37 = vadd.f32 %v1462_v16, %v1407_v29  ;;  %1877 = vmatmul.f32.vlgmr.msra.gmra.mxu0 %v4232_v60  ;;  %1944 = vmatmul.f32.gmra.mxu1 %v1734_v45  ;;  %v880_v60 = vmul.f32 0.48296, %v3303_v47  ;;  %v3304_v45 = vld [vmem:[%s3753_s9 + $0x38] sm:$0xff] }
 0x153   : > { %2413 = vmatpush.msra.mxu0 %v4031_v3  ;;  %2645 = vmatpush.msra.mxu3 %v4171_v0  ;;  %v888_v39 = vmul.f32 -0.12941, %v3304_v45  ;;  %v895_v3 = vadd.f32 %v887_v35, %v879_v7  ;;  %v864_v56 = vmul.f32 0.83652, %v3304_v45 }
 0x154   : > { %v4513_v63 = vadd.f32 %v1523_v46, %v1463_v37  ;;  %2014 = vmatmul.f32.gmra.mxu2 %v4240_v17  ;;  %1170 = vrot.lane.b32.xlu2 %v957_v2, %s3559_s28  ;;  %v3305_v37 = vld [vmem:[%s3739_s19 + $0x28] sm:$0xff] }
 0x155   : > { %2417 = vmatpush.msra.mxu0 %v5134_v36  ;;  %v896_v31 = vadd.f32 %v888_v39, %v880_v60  ;;  %v917_v51 = vrot.slane %v895_v3, 1  ;;  %v854_v25 = vmul.f32 0.22414, %v3305_v37  ;;  %v5138_v39 = vand.u32 4294901760, %v4360_v11 }
 0x156   : > { %2066 = vmatmul.f32.gmra.mxu3 %v4240_v17 }
 0x157   : > { %v1322_v0 = vpop.f32.mrf.mxu0  ;;  %v1414_v30 = vpop.f32.mrf.mxu1  ;;  %2421 = vmatpush.msra.mxu0 %v5135_v44  ;;  %v919_v5 = vrot.slane %v896_v31, 1  ;;  %v918_v35 = vsel %vm905_vm9, %v915_v8, %v917_v51 }
 0x158   : > { %v1411_v1 = vadd.f32 %v1410_v48, %v1322_v0  ;;  %v1467_v20 = vpop.f32.mrf.mxu2  ;;  %v5136_v48 = vrot.slane %v4395_v22, 1 }
 0x159   : > { %v1529_v13 = vpop.f32.mrf.mxu3  ;;  %v920_v17 = vsel %vm905_vm9, %v917_v51, %v919_v5 }
 0x15a   : > { %v1468_v59 = vadd.f32 %v1467_v20, %v1411_v1  ;;  %1882 = vmatmul.f32.gmra.mxu0 %v4256_v28  ;;  %1950 = vmatmul.f32.gmra.mxu1 %v1742_v50  ;;  %v961_v24 = vadd.f32 %v920_v17, %v871_v21  ;;  %v872_v50 = vadd.f32 %v864_v56, %v856_v12 }
 0x15b   : > { %v930_v38 = vsel %vm905_vm9, %v919_v5, %v5136_v48 }
 0x15c   : > { %v4530_v42 = vadd.f32 %v1529_v13, %v1468_v59  ;;  %2018 = vmatmul.f32.gmra.mxu2 %v4268_v32  ;;  %1178 = vrot.lane.b32.xlu0 %v961_v24, %s3559_s28  ;;  %v954_v29 = vsel %vm4454_vm13, %v930_v38, 0.0 }
 0x15d   : > { %v962_v16 = vadd.f32 %v954_v29, %v872_v50  ;;  %v1215_v9 = vpop.permute.xlu1 %1214 }
 0x15e   : > { %2070 = vmatmul.f32.gmra.mxu3 %v4268_v32  ;;  %v5137_v32 = vand.u32 4294901760, %v4328_v33  ;;  %v1238_v44 = vsel %vm1092_vm6, 0.0, %v1215_v9 }
 0x15f   : > { %v1330_v58 = vpop.f32.mrf.mxu0  ;;  %v1418_v14 = vpop.f32.mrf.mxu1  ;;  %1180 = vrot.lane.b32.xlu1 %v962_v16, %s3559_s28 }
 0x160   : > { %v1415_v52 = vadd.f32 %v1414_v30, %v1330_v58  ;;  %v1472_v28 = vpop.f32.mrf.mxu2 }
 0x161   : > { %v1535_v10 = vpop.f32.mrf.mxu3 }
 0x162   : > { %v1473_v43 = vadd.f32 %v1472_v28, %v1415_v52  ;;  %1887 = vmatmul.f32.gmra.mxu0 %v4285_v54  ;;  %1956 = vmatmul.f32.gmra.mxu1 %v5137_v32  ;;  %v3306_v54 = vld [vmem:[%s3753_s9 + $0x28] sm:$0xff]  ;;  %v5140_v52 = vand.u32 4294901760, %v4441_v40 }
 0x163   : > { %v862_v2 = vmul.f32 0.83652, %v3306_v54 }
 0x164   : > { %v4543_v46 = vadd.f32 %v1535_v10, %v1473_v43  ;;  %2022 = vmatmul.f32.gmra.mxu2 %v4308_v26 }
 0x165   : > { %v870_v57 = vadd.f32 %v862_v2, %v854_v25 }
 0x166   : > { %2074 = vmatmul.f32.gmra.mxu3 %v4308_v26  ;;  %v952_v26 = vsel %vm4319_vm12, %v918_v35, 0.0 }
 0x167   : > { %v1338_v22 = vpop.f32.mrf.mxu0  ;;  %v1422_v61 = vpop.f32.mrf.mxu1  ;;  %v960_v36 = vadd.f32 %v952_v26, %v870_v57 }
 0x168   : > { %v1419_v7 = vadd.f32 %v1418_v14, %v1338_v22  ;;  %v1477_v47 = vpop.f32.mrf.mxu2 }
 0x169   : > { %v1541_v60 = vpop.f32.mrf.mxu3  ;;  %1176 = vrot.lane.b32.xlu2 %v960_v36, %s3559_s28 }
 0x16a   : > { %v1478_v45 = vadd.f32 %v1477_v47, %v1419_v7  ;;  %1892 = vmatmul.f32.gmra.mxu0 %v4328_v33  ;;  %1962 = vmatmul.f32.gmra.mxu1 %v5138_v39 }
 0x16c   : > { %v4558_v3 = vadd.f32 %v1541_v60, %v1478_v45  ;;  %2026 = vmatmul.f32.gmra.mxu2 %v4346_v27  ;;  %v5141_v60 = vld [vmem:[#allocation23_spill] sm:$0xff]  ;;  %v5142_v45 = vld [vmem:[#allocation25_spill] sm:$0xff] }
 0x16d   : > { %v1219_v50 = vpop.permute.xlu0 %1218 }
 0x16e   : > { %2078 = vmatmul.f32.gmra.mxu3 %v4346_v27 }
 0x16f   : > { %v1346_v15 = vpop.f32.mrf.mxu0  ;;  %v1426_v8 = vpop.f32.mrf.mxu1 }
 0x170   : > { %v1423_v0 = vadd.f32 %v1422_v61, %v1346_v15  ;;  %v1482_v30 = vpop.f32.mrf.mxu2 }
 0x171   : > { %v1547_v33 = vpop.f32.mrf.mxu3 }
 0x172   : > { %v1483_v41 = vadd.f32 %v1482_v30, %v1423_v0  ;;  %1897 = vmatmul.f32.gmra.mxu0 %v4360_v11  ;;  %1968 = vmatmul.f32.gmra.mxu1 %v1766_v62  ;;  %v5139_v11 = vand.u32 4294901760, %v4419_v18  ;;  %v1246_v62 = vsel %vm1101_vm7, %v1238_v44, 0.0  ;;  %v5143_v0 = vld [vmem:[#allocation27_spill] sm:$0xff]  ;;  %v5144_v30 = vld [vmem:[#allocation22_spill] sm:$0xff] }
 0x173   : > { %v2095_v5 = vsel %vm1260_vm8, %v1246_v62, 0 }
 0x174   : > { %v4566_v19 = vadd.f32 %v1547_v33, %v1483_v41  ;;  %2030 = vmatmul.f32.gmra.mxu2 %v4374_v53  ;;  %v4581_v14 = vand.u32 4294901760, %v2095_v5 }
 0x176   : > { %2082 = vmatmul.f32.gmra.mxu3 %v4374_v53  ;;  %v1217_v53 = vpop.permute.xlu2 %1216  ;;  %v2138_v10 = vsub.f32 %v2095_v5, %v4581_v14  ;;  %v1221_v7 = vpop.permute.xlu1 %1220 }
 0x177   : > { %v1354_v31 = vpop.f32.mrf.mxu0  ;;  %v1430_v27 = vpop.f32.mrf.mxu1  ;;  %v1239_v24 = vsel %vm1092_vm6, 0.0, %v1217_v53  ;;  %v1241_v35 = vsel %vm1092_vm6, 0.0, %v1221_v7 }
 0x178   : > { %v1427_v1 = vadd.f32 %v1426_v8, %v1354_v31  ;;  %v1487_v20 = vpop.f32.mrf.mxu2  ;;  %v1247_v28 = vsel %vm1101_vm7, %v1239_v24, 0.0  ;;  %v2139_v32 = vand.u32 4294901760, %v2138_v10 }
 0x179   : > { %v1553_v51 = vpop.f32.mrf.mxu3  ;;  %v2098_v48 = vsel %vm1260_vm8, %v1247_v28, 0 }
 0x17a   : > { %v1488_v13 = vadd.f32 %v1487_v20, %v1427_v1  ;;  %1902 = vmatmul.f32.gmra.mxu0 %v4391_v6  ;;  %1974 = vmatmul.f32.gmra.mxu1 %v5139_v11  ;;  %v4596_v22 = vand.u32 4294901760, %v2098_v48  ;;  %v5146_v20 = vld [vmem:[#allocation26_spill] sm:$0xff] }
 0x17c   : > { %v4575_v21 = vadd.f32 %v1553_v51, %v1488_v13  ;;  %2034 = vmatmul.f32.gmra.mxu2 %v4401_v4  ;;  %v2146_v54 = vsub.f32 %v2098_v48, %v4596_v22 }
 0x17e   : > { %2086 = vmatmul.f32.gmra.mxu3 %v4401_v4  ;;  %v2147_v15 = vand.u32 4294901760, %v2146_v54  ;;  %v1223_v9 = vpop.permute.xlu2 %1222 }
 0x17f   : > { %v1362_v59 = vpop.f32.mrf.mxu0  ;;  %v1434_v17 = vpop.f32.mrf.mxu1  ;;  %v1242_v1 = vsel %vm1092_vm6, 0.0, %v1223_v9 }
 0x180   : > { %v1431_v58 = vadd.f32 %v1430_v27, %v1362_v59  ;;  %v1492_v6 = vpop.f32.mrf.mxu2  ;;  %v2148_v41 = vsub.f32 %v2146_v54, %v2147_v15  ;;  %v5145_v27 = vld [vmem:[#allocation24_spill] sm:$0xff]  ;;  %v1250_v53 = vsel %vm1101_vm7, %v1242_v1, 0.0 }
 0x181   : > { %v1559_v12 = vpop.f32.mrf.mxu3  ;;  %v2107_v24 = vsel %vm1260_vm8, %v1250_v53, 0 }
 0x182   : > { %v1493_v56 = vadd.f32 %v1492_v6, %v1431_v58  ;;  %1907 = vmatmul.f32.gmra.mxu0 %v4419_v18  ;;  %1980 = vmatmul.f32.gmra.mxu1 %v5140_v52  ;;  %v1240_v18 = vsel %vm1092_vm6, 0.0, %v1219_v50  ;;  %v2149_v13 = vand.u32 4294901760, %v2148_v41  ;;  %v4654_v52 = vand.u32 4294901760, %v2107_v24 }
 0x183   : > { %v1248_v25 = vsel %vm1101_vm7, %v1240_v18, 0.0 }
 0x184   : > { %v4588_v4 = vadd.f32 %v1559_v12, %v1493_v56  ;;  %2038 = vmatmul.f32.gmra.mxu2 %v4430_v49  ;;  %v2101_v47 = vsel %vm1260_vm8, %v1248_v25, 0 }
 0x185   : > { %v4617_v36 = vand.u32 4294901760, %v2101_v47 }
 0x186   : > { %2090 = vmatmul.f32.gmra.mxu3 %v4430_v49  ;;  %v2140_v49 = vsub.f32 %v2138_v10, %v2139_v32 }
 0x187   : > { %v1370_v38 = vpop.f32.mrf.mxu0  ;;  %v4593_v43 = vpop.f32.mrf.mxu1  ;;  %v2154_v33 = vsub.f32 %v2101_v47, %v4617_v36 }
 0x188   : > { %v1435_v29 = vadd.f32 %v1434_v17, %v1370_v38  ;;  %v1497_v16 = vpop.f32.mrf.mxu2  ;;  %v2141_v39 = vand.u32 4294901760, %v2140_v49  ;;  %v1225_v17 = vpop.permute.xlu0 %1224  ;;  %v2170_v38 = vsub.f32 %v2107_v24, %v4654_v52 }
 0x189   : > { %v1565_v61 = vpop.f32.mrf.mxu3  ;;  %v2155_v11 = vand.u32 4294901760, %v2154_v33  ;;  %v1243_v12 = vsel %vm1092_vm6, 0.0, %v1225_v17 }
 0x18a   : > { %v1498_v37 = vadd.f32 %v1497_v16, %v1435_v29  ;;  %1912 = vmatmul.f32.gmra.mxu0 %v4441_v40  ;;  %2234 = vmatmul.f32.vlgmr.msrb.gmra.mxu1 %v4581_v14  ;;  %v1251_v48 = vsel %vm1101_vm7, %v1243_v12, 0.0  ;;  %v2171_v7 = vand.u32 4294901760, %v2170_v38 }
 0x18b   : > { %2756 = vmatpush.msrb.mxu1 %v4078_v55  ;;  %v2156_v59 = vsub.f32 %v2154_v33, %v2155_v11  ;;  %v2110_v29 = vsel %vm1260_vm8, %v1251_v48, 0 }
 0x18c   : > { %v4603_v2 = vadd.f32 %v1565_v61, %v1498_v37  ;;  %2290 = vmatmul.f32.vlgmr.msrb.gmra.mxu2 %v2138_v10  ;;  %v4669_v49 = vand.u32 4294901760, %v2110_v29 }
 0x18d   : > { %2826 = vmatpush.msrb.mxu2 %v5141_v60  ;;  %2758 = vmatpush.msrb.mxu1 %v4105_v23  ;;  %v2157_v28 = vand.u32 4294901760, %v2156_v59 }
 0x18e   : > { %2351 = vmatmul.f32.vlgmr.msrb.gmra.mxu3 %v2139_v32  ;;  %v1227_v32 = vpop.permute.xlu1 %1226 }
 0x18f   : > { %v4608_v40 = vpop.f32.mrf.mxu0  ;;  %v4610_v57 = vpop.f32.mrf.mxu1  ;;  %2882 = vmatpush.msrb.mxu3 %v4078_v55  ;;  %2830 = vmatpush.msrb.mxu2 %v5142_v45  ;;  %v1249_v55 = vsel %vm1101_vm7, %v1241_v35, 0.0  ;;  %v1244_v37 = vsel %vm1092_vm6, 0.0, %v1227_v32  ;;  %v2178_v35 = vsub.f32 %v2110_v29, %v4669_v49  ;;  %v2172_v45 = vsub.f32 %v2170_v38, %v2171_v7 }
 0x190   : > { %v4615_v26 = vpop.f32.mrf.mxu2  ;;  %2760 = vmatpush.msrb.mxu1 %v4148_v34  ;;  %v2104_v31 = vsel %vm1260_vm8, %v1249_v55, 0  ;;  %v1252_v60 = vsel %vm1101_vm7, %v1244_v37, 0.0 }
 0x191   : > { %v4620_v8 = vpop.f32.mrf.mxu3  ;;  %2884 = vmatpush.msrb.mxu3 %v4105_v23  ;;  %2834 = vmatpush.msrb.mxu2 %v5143_v0  ;;  %v2113_v0 = vsel %vm1260_vm8, %v1252_v60, 0  ;;  %v2179_v1 = vand.u32 4294901760, %v2178_v35 }
 0x192   : > { %2142 = vmatmul.f32.vlgmr.msrb.gmra.mxu0 %v2141_v39  ;;  %2238 = vmatmul.f32.gmra.mxu1 %v4596_v22 }
 0x193   : > { %2694 = vmatpush.msrb.mxu0 %v5144_v30  ;;  %2886 = vmatpush.msrb.mxu3 %v4148_v34  ;;  %v4639_v34 = vand.u32 4294901760, %v2104_v31 }
 0x194   : > { %2295 = vmatmul.f32.gmra.mxu2 %v2146_v54 }
 0x195   : > { %2697 = vmatpush.msrb.mxu0 %v5145_v27  ;;  %v2162_v5 = vsub.f32 %v2104_v31, %v4639_v34  ;;  %v1229_v39 = vpop.permute.xlu2 %1228  ;;  %v4685_v31 = vand.u32 4294901760, %v2113_v0  ;;  %v2173_v27 = vand.u32 4294901760, %v2172_v45 }
 0x196   : > { %2357 = vmatmul.f32.gmra.mxu3 %v2147_v15 }
 0x197   : > { %v4631_v23 = vpop.f32.mrf.mxu0  ;;  %v4633_v44 = vpop.f32.mrf.mxu1  ;;  %2700 = vmatpush.msrb.mxu0 %v5146_v20  ;;  %v2163_v10 = vand.u32 4294901760, %v2162_v5  ;;  %v2186_v53 = vsub.f32 %v2113_v0, %v4685_v31 }
 0x198   : > { %v4637_v51 = vpop.f32.mrf.mxu2 }
 0x199   : > { %v4641_v62 = vpop.f32.mrf.mxu3  ;;  %v2164_v18 = vsub.f32 %v2162_v5, %v2163_v10  ;;  %v2187_v29 = vand.u32 4294901760, %v2186_v53 }
 0x19a   : > { %2150 = vmatmul.f32.gmra.mxu0 %v2149_v13  ;;  %2242 = vmatmul.f32.gmra.mxu1 %v4617_v36 }
 0x19b   : > { %v2165_v54 = vand.u32 4294901760, %v2164_v18 }
 0x19c   : > { %2300 = vmatmul.f32.gmra.mxu2 %v2154_v33  ;;  %v1245_v33 = vsel %vm1092_vm6, 0.0, %v1229_v39 }
 0x19d   : > { %v1167_v15 = vpop.permute.xlu0 %1166  ;;  %v1253_v13 = vsel %vm1101_vm7, %v1245_v33, 0.0 }
 0x19e   : > { %2363 = vmatmul.f32.gmra.mxu3 %v2155_v11  ;;  %v1190_v41 = vsel %vm1092_vm6, 0.0, %v1167_v15  ;;  %v2116_v17 = vsel %vm1260_vm8, %v1253_v13, 0 }
 0x19f   : > { %v4647_v58 = vpop.f32.mrf.mxu0  ;;  %v4649_v6 = vpop.f32.mrf.mxu1  ;;  %v1198_v11 = vsel %vm1101_vm7, %v1190_v41, 0.0 }
 0x1a0   : > { %v4652_v56 = vpop.f32.mrf.mxu2  ;;  %v2508_v24 = vsel %vm1260_vm8, %v1198_v11, 0 }
 0x1a1   : > { %v4656_v50 = vpop.f32.mrf.mxu3  ;;  %v4704_v32 = vand.u32 4294901760, %v2508_v24 }
 0x1a2   : > { %2158 = vmatmul.f32.gmra.mxu0 %v2157_v28  ;;  %2246 = vmatmul.f32.gmra.mxu1 %v4639_v34  ;;  %v1169_v59 = vpop.permute.xlu1 %1168 }
 0x1a3   : > { %v4712_v60 = vsub.f32 %v2508_v24, %v4704_v32 }
 0x1a4   : > { %2305 = vmatmul.f32.gmra.mxu2 %v2162_v5  ;;  %v2180_v5 = vsub.f32 %v2178_v35, %v2179_v1 }
 0x1a5   : > { %5147 = vst [vmem:[#allocation20_spill] sm:$0xff] %v4712_v60  ;;  %v5083_v41 = vand.u32 4294901760, %v4712_v60 }
 0x1a6   : > { %2369 = vmatmul.f32.gmra.mxu3 %v2163_v10  ;;  %v1191_v10 = vsel %vm1092_vm6, 0.0, %v1169_v59  ;;  %v2181_v18 = vand.u32 4294901760, %v2180_v5 }
 0x1a7   : > { %v4662_v16 = vpop.f32.mrf.mxu0  ;;  %v4664_v61 = vpop.f32.mrf.mxu1 }
 0x1a8   : > { %v4667_v25 = vpop.f32.mrf.mxu2 }
 0x1a9   : > { %v4671_v47 = vpop.f32.mrf.mxu3 }
 0x1aa   : > { %2166 = vmatmul.f32.gmra.mxu0 %v2165_v54  ;;  %2250 = vmatmul.f32.gmra.mxu1 %v4654_v52  ;;  %v1199_v54 = vsel %vm1101_vm7, %v1191_v10, 0.0 }
 0x1ab   : > { %v2511_v39 = vsel %vm1260_vm8, %v1199_v54, 0 }
 0x1ac   : > { %2310 = vmatmul.f32.gmra.mxu2 %v2170_v38  ;;  %v4702_v38 = vand.u32 4294901760, %v2116_v17  ;;  %v4723_v13 = vand.u32 4294901760, %v2511_v39 }
 0x1ae   : > { %2375 = vmatmul.f32.gmra.mxu3 %v2171_v7  ;;  %v2194_v7 = vsub.f32 %v2116_v17, %v4702_v38  ;;  %v1171_v45 = vpop.permute.xlu2 %1170  ;;  %v2553_v17 = vsub.f32 %v4712_v60, %v5083_v41  ;;  %v4735_v24 = vsub.f32 %v2511_v39, %v4723_v13 }
 0x1af   : > { %v4677_v55 = vpop.f32.mrf.mxu0  ;;  %v4679_v30 = vpop.f32.mrf.mxu1  ;;  %v1192_v33 = vsel %vm1092_vm6, 0.0, %v1171_v45 }
 0x1b0   : > { %v4683_v9 = vpop.f32.mrf.mxu2  ;;  %v2195_v11 = vand.u32 4294901760, %v2194_v7  ;;  %v1200_v59 = vsel %vm1101_vm7, %v1192_v33, 0.0  ;;  %5148 = vst [vmem:[#allocation21_spill] sm:$0xff] %v4735_v24  ;;  %v2554_v45 = vand.u32 4294901760, %v2553_v17 }
 0x1b1   : > { %v4687_v20 = vpop.f32.mrf.mxu3 }
 0x1b2   : > { %2174 = vmatmul.f32.gmra.mxu0 %v2173_v27  ;;  %2254 = vmatmul.f32.gmra.mxu1 %v4669_v49  ;;  %v2196_v10 = vsub.f32 %v2194_v7, %v2195_v11 }
 0x1b4   : > { %2315 = vmatmul.f32.gmra.mxu2 %v2178_v35  ;;  %v2188_v35 = vsub.f32 %v2186_v53, %v2187_v29 }
 0x1b6   : > { %2381 = vmatmul.f32.gmra.mxu3 %v2179_v1  ;;  %v2189_v1 = vand.u32 4294901760, %v2188_v35 }
 0x1b7   : > { %v4695_v12 = vpop.f32.mrf.mxu0  ;;  %v4697_v28 = vpop.f32.mrf.mxu1 }
 0x1b8   : > { %v4700_v48 = vpop.f32.mrf.mxu2 }
 0x1b9   : > { %v4706_v37 = vpop.f32.mrf.mxu3 }
 0x1ba   : > { %2182 = vmatmul.f32.gmra.mxu0 %v2181_v18  ;;  %2258 = vmatmul.f32.gmra.mxu1 %v4685_v31  ;;  %v1173_v18 = vpop.permute.xlu0 %1172 }
 0x1bb   : > { %v1193_v35 = vsel %vm1092_vm6, 0.0, %v1173_v18 }
 0x1bc   : > { %2320 = vmatmul.f32.gmra.mxu2 %v2186_v53  ;;  %v1596_v53 = vadd.f32 %v4608_v40, %v4513_v63 }
 0x1be   : > { %2387 = vmatmul.f32.gmra.mxu3 %v2187_v29  ;;  %v2514_v29 = vsel %vm1260_vm8, %v1200_v59, 0  ;;  %v1648_v63 = vadd.f32 %v4593_v43, %v1596_v53  ;;  %v1600_v43 = vadd.f32 %v4631_v23, %v4530_v42 }
 0x1bf   : > { %v4715_v15 = vpop.f32.mrf.mxu0  ;;  %v4717_v0 = vpop.f32.mrf.mxu1  ;;  %v4744_v41 = vand.u32 4294901760, %v2514_v29 }
 0x1c0   : > { %v4721_v27 = vpop.f32.mrf.mxu2  ;;  %v1731_v59 = vadd.f32 %v4615_v26, %v1648_v63  ;;  %v1652_v42 = vadd.f32 %v4610_v57, %v1600_v43  ;;  %v1604_v57 = vadd.f32 %v4647_v58, %v4543_v46 }
 0x1c1   : > { %v4725_v5 = vpop.f32.mrf.mxu3  ;;  %v4756_v53 = vsub.f32 %v2514_v29, %v4744_v41 }
 0x1c2   : > { %2190 = vmatmul.f32.gmra.mxu0 %v2189_v1  ;;  %2262 = vmatmul.f32.gmra.mxu1 %v4702_v38  ;;  %v2197_v1 = vand.u32 4294901760, %v2196_v10  ;;  %v1175_v10 = vpop.permute.xlu1 %1174  ;;  %v1823_v18 = vadd.f32 %v4620_v8, %v1731_v59  ;;  %v1656_v58 = vadd.f32 %v4633_v44, %v1604_v57  ;;  %v1608_v44 = vadd.f32 %v4662_v16, %v4558_v3 }
 0x1c4   : > { %2325 = vmatmul.f32.gmra.mxu2 %v2194_v7  ;;  %v5086_v7 = vand.u32 4294901760, %v4735_v24 }
 0x1c6   : > { %2393 = vmatmul.f32.gmra.mxu3 %v2195_v11  ;;  %v1201_v11 = vsel %vm1101_vm7, %v1193_v35, 0.0  ;;  %v2561_v17 = vsub.f32 %v4735_v24, %v5086_v7  ;;  %v1194_v35 = vsel %vm1092_vm6, 0.0, %v1175_v10  ;;  %v2568_v7 = vand.u32 4294901760, %v4756_v53  ;;  %v1177_v10 = vpop.permute.xlu2 %1176 }
 0x1c7   : > { %v4739_v40 = vpop.f32.mrf.mxu0  ;;  %v1939_v54 = vpop.f32.mrf.mxu1  ;;  %v2517_v26 = vsel %vm1260_vm8, %v1201_v11, 0  ;;  %v1739_v11 = vadd.f32 %v4637_v51, %v1652_v42  ;;  %v1202_v59 = vsel %vm1101_vm7, %v1194_v35, 0.0  ;;  %v1195_v42 = vsel %vm1092_vm6, 0.0, %v1177_v10 }
 0x1c8   : > { %v4742_v33 = vpop.f32.mrf.mxu2  ;;  %v4767_v60 = vand.u32 4294901760, %v2517_v26  ;;  %v2569_v51 = vsub.f32 %v4756_v53, %v2568_v7  ;;  %v2520_v46 = vsel %vm1260_vm8, %v1202_v59, 0 }
 0x1c9   : > { %v4747_v39 = vpop.f32.mrf.mxu3 }
 0x1ca   : > { %2198 = vmatmul.f32.gmra.mxu0 %v2197_v1  ;;  %2475 = vmatmul.f32.vlgmr.msra.gmra.mxu1 %v4581_v14  ;;  %v2562_v1 = vand.u32 4294901760, %v2561_v17  ;;  %v4777_v17 = vsub.f32 %v2517_v26, %v4767_v60 }
 0x1cc   : > { %2555 = vmatmul.f32.vlgmr.msra.gmra.mxu2 %v2554_v45 }
 0x1ce   : > { %2647 = vmatmul.f32.vlgmr.msra.gmra.mxu3 %v4704_v32 }
 0x1cf   : > { %v1878_v23 = vpop.f32.mrf.mxu0  ;;  %v1945_v63 = vpop.f32.mrf.mxu1 }
 0x1d0   : > { %v1879_v29 = vadd.f32 %v1878_v23, %v1823_v18  ;;  %v2011_v45 = vpop.f32.mrf.mxu2 }
 0x1d1   : > { %v2063_v24 = vpop.f32.mrf.mxu3 }
 0x1d2   : > { %v1940_v8 = vadd.f32 %v1939_v54, %v1879_v29  ;;  %2423 = vmatmul.f32.vlgmr.msra.gmra.mxu0 %v4581_v14  ;;  %2479 = vmatmul.f32.gmra.mxu1 %v4596_v22  ;;  %v1827_v14 = vadd.f32 %v4641_v62, %v1739_v11  ;;  %v2570_v29 = vand.u32 4294901760, %v2569_v51  ;;  %v1747_v62 = vadd.f32 %v4652_v56, %v1656_v58 }
 0x1d3   : > { %v1203_v11 = vsel %vm1101_vm7, %v1195_v42, 0.0 }
 0x1d4   : > { %v2012_v43 = vadd.f32 %v2011_v45, %v1940_v8  ;;  %2563 = vmatmul.f32.gmra.mxu2 %v2562_v1  ;;  %v4794_v45 = vand.u32 4294901760, %v2520_v46  ;;  %v2576_v1 = vand.u32 4294901760, %v4777_v17  ;;  %v2523_v3 = vsel %vm1260_vm8, %v1203_v11, 0 }
 0x1d5   : > { %v1831_v16 = vadd.f32 %v4656_v50, %v1747_v62 }
 0x1d6   : > { %v2064_v54 = vadd.f32 %v2063_v24, %v2012_v43  ;;  %2651 = vmatmul.f32.gmra.mxu3 %v4723_v13  ;;  %v4804_v59 = vsub.f32 %v2520_v46, %v4794_v45  ;;  %v2577_v56 = vsub.f32 %v4777_v17, %v2576_v1  ;;  %v1179_v43 = vpop.permute.xlu0 %1178 }
 0x1d7   : > { %v1883_v26 = vpop.f32.mrf.mxu0  ;;  %v1951_v18 = vpop.f32.mrf.mxu1 }
 0x1d8   : > { %2921 = vst.msk [vmem:[%s4785_s24] sm:$0xff] %vm2920_vm14, %v2064_v54  ;;  %v1884_v23 = vadd.f32 %v1883_v26, %v1827_v14  ;;  %v2015_v35 = vpop.f32.mrf.mxu2  ;;  %v1196_v14 = vsel %vm1092_vm6, 0.0, %v1179_v43  ;;  %v2578_v54 = vand.u32 4294901760, %v2577_v56  ;;  %v4816_v26 = vand.u32 4294901760, %v2523_v3 }
 0x1d9   : > { %v2067_v8 = vpop.f32.mrf.mxu3  ;;  %v2584_v42 = vand.u32 4294901760, %v4804_v59 }
 0x1da   : > { %v1946_v24 = vadd.f32 %v1945_v63, %v1884_v23  ;;  %2427 = vmatmul.f32.gmra.mxu0 %v4596_v22  ;;  %2483 = vmatmul.f32.gmra.mxu1 %v4617_v36  ;;  %v1660_v22 = vadd.f32 %v4649_v6, %v1608_v44  ;;  %v1612_v6 = vadd.f32 %v4677_v55, %v4566_v19  ;;  %v1181_v44 = vpop.permute.xlu1 %1180 }
 0x1db   : > { %v4826_v62 = vsub.f32 %v2523_v3, %v4816_v26 }
 0x1dc   : > { %v2016_v57 = vadd.f32 %v2015_v35, %v1946_v24  ;;  %2571 = vmatmul.f32.gmra.mxu2 %v2570_v29  ;;  %v1755_v50 = vadd.f32 %v4667_v25, %v1660_v22  ;;  %v1204_v29 = vsel %vm1101_vm7, %v1196_v14, 0.0  ;;  %v2585_v25 = vsub.f32 %v4804_v59, %v2584_v42 }
 0x1dd   : > { %v2526_v19 = vsel %vm1260_vm8, %v1204_v29, 0  ;;  %v2592_v22 = vand.u32 4294901760, %v4826_v62 }
 0x1de   : > { %v2068_v63 = vadd.f32 %v2067_v8, %v2016_v57  ;;  %2655 = vmatmul.f32.gmra.mxu3 %v4744_v41  ;;  %v1835_v55 = vadd.f32 %v4671_v47, %v1755_v50  ;;  %v1197_v57 = vsel %vm1092_vm6, 0.0, %v1181_v44  ;;  %v2586_v3 = vand.u32 4294901760, %v2585_v25 }
 0x1df   : > { %v1888_v51 = vpop.f32.mrf.mxu0  ;;  %v1957_v10 = vpop.f32.mrf.mxu1  ;;  %v1205_v14 = vsel %vm1101_vm7, %v1197_v57, 0.0 }
 0x1e0   : > { %2922 = vst.msk [vmem:[%s4785_s24 + $0x8] sm:$0xff] %vm2920_vm14, %v2068_v63  ;;  %v1889_v46 = vadd.f32 %v1888_v51, %v1831_v16  ;;  %v2019_v58 = vpop.f32.mrf.mxu2  ;;  %v4838_v16 = vand.u32 4294901760, %v2526_v19 }
 0x1e1   : > { %v2071_v23 = vpop.f32.mrf.mxu3 }
 0x1e2   : > { %v1952_v35 = vadd.f32 %v1951_v18, %v1889_v46  ;;  %2431 = vmatmul.f32.gmra.mxu0 %v4617_v36  ;;  %2487 = vmatmul.f32.gmra.mxu1 %v4639_v34  ;;  %v1664_v36 = vadd.f32 %v4664_v61, %v1612_v6  ;;  %v1616_v61 = vadd.f32 %v4695_v12, %v4575_v21 }
 0x1e4   : > { %v2020_v8 = vadd.f32 %v2019_v58, %v1952_v35  ;;  %2579 = vmatmul.f32.gmra.mxu2 %v2578_v54  ;;  %v1763_v47 = vadd.f32 %v4683_v9, %v1664_v36  ;;  %v4848_v58 = vsub.f32 %v2526_v19, %v4838_v16  ;;  %v2593_v9 = vsub.f32 %v4826_v62, %v2592_v22 }
 0x1e5   : > { %v2529_v54 = vsel %vm1260_vm8, %v1205_v14, 0  ;;  %v1668_v12 = vadd.f32 %v4679_v30, %v1616_v61  ;;  %v1620_v30 = vadd.f32 %v4715_v15, %v4588_v4 }
 0x1e6   : > { %v2072_v18 = vadd.f32 %v2071_v23, %v2020_v8  ;;  %2659 = vmatmul.f32.gmra.mxu3 %v4767_v60  ;;  %v1839_v21 = vadd.f32 %v4687_v20, %v1763_v47  ;;  %v2594_v35 = vand.u32 4294901760, %v2593_v9  ;;  %v4859_v29 = vand.u32 4294901760, %v2529_v54 }
 0x1e7   : > { %v1893_v24 = vpop.f32.mrf.mxu0  ;;  %v1963_v11 = vpop.f32.mrf.mxu1  ;;  %v2600_v8 = vand.u32 4294901760, %v4848_v58  ;;  %v1771_v20 = vadd.f32 %v4700_v48, %v1668_v12  ;;  %v1672_v48 = vadd.f32 %v4697_v28, %v1620_v30 }
 0x1e8   : > { %2923 = vst.msk [vmem:[%s4785_s24 + $0x10] sm:$0xff] %vm2920_vm14, %v2072_v18  ;;  %v1894_v56 = vadd.f32 %v1893_v24, %v1835_v55  ;;  %v2023_v43 = vpop.f32.mrf.mxu2  ;;  %v4868_v55 = vsub.f32 %v2529_v54, %v4859_v29 }
 0x1e9   : > { %v2075_v63 = vpop.f32.mrf.mxu3  ;;  %v2601_v36 = vsub.f32 %v4848_v58, %v2600_v8  ;;  %v1843_v18 = vadd.f32 %v4706_v37, %v1771_v20  ;;  %v1624_v37 = vadd.f32 %v4739_v40, %v4603_v2 }
 0x1ea   : > { %v1958_v51 = vadd.f32 %v1957_v10, %v1894_v56  ;;  %2435 = vmatmul.f32.gmra.mxu0 %v4639_v34  ;;  %2491 = vmatmul.f32.gmra.mxu1 %v4654_v52  ;;  %v2608_v56 = vand.u32 4294901760, %v4868_v55 }
 0x1eb   : > { %v2602_v57 = vand.u32 4294901760, %v2601_v36 }
 0x1ec   : > { %v2024_v46 = vadd.f32 %v2023_v43, %v1958_v51  ;;  %2587 = vmatmul.f32.gmra.mxu2 %v2586_v3  ;;  %v1779_v3 = vadd.f32 %v4721_v27, %v1672_v48  ;;  %v2609_v47 = vsub.f32 %v4868_v55, %v2608_v56  ;;  %v1676_v51 = vadd.f32 %v4717_v0, %v1624_v37 }
 0x1ee   : > { %v2076_v34 = vadd.f32 %v2075_v63, %v2024_v46  ;;  %2663 = vmatmul.f32.gmra.mxu3 %v4794_v45  ;;  %v1847_v61 = vadd.f32 %v4725_v5, %v1779_v3  ;;  %v2610_v46 = vand.u32 4294901760, %v2609_v47  ;;  %v1787_v54 = vadd.f32 %v4742_v33, %v1676_v51 }
 0x1ef   : > { %v1898_v10 = vpop.f32.mrf.mxu0  ;;  %v1969_v23 = vpop.f32.mrf.mxu1 }
 0x1f0   : > { %2924 = vst.msk [vmem:[%s4785_s24 + $0x18] sm:$0xff] %vm2920_vm14, %v2076_v34  ;;  %v1899_v50 = vadd.f32 %v1898_v10, %v1839_v21  ;;  %v2027_v6 = vpop.f32.mrf.mxu2  ;;  %v1851_v5 = vadd.f32 %v4747_v39, %v1787_v54 }
 0x1f1   : > { %v2079_v25 = vpop.f32.mrf.mxu3 }
 0x1f2   : > { %v1964_v44 = vadd.f32 %v1963_v11, %v1899_v50  ;;  %2439 = vmatmul.f32.gmra.mxu0 %v4654_v52  ;;  %2495 = vmatmul.f32.gmra.mxu1 %v4669_v49 }
 0x1f4   : > { %v2028_v19 = vadd.f32 %v2027_v6, %v1964_v44  ;;  %2595 = vmatmul.f32.gmra.mxu2 %v2594_v35 }
 0x1f6   : > { %v2080_v24 = vadd.f32 %v2079_v25, %v2028_v19  ;;  %2667 = vmatmul.f32.gmra.mxu3 %v4816_v26 }
 0x1f7   : > { %v1903_v4 = vpop.f32.mrf.mxu0  ;;  %v1975_v52 = vpop.f32.mrf.mxu1 }
 0x1f8   : > { %2925 = vst.msk [vmem:[%s4785_s24 + $0x20] sm:$0xff] %vm2920_vm14, %v2080_v24  ;;  %v1904_v15 = vadd.f32 %v1903_v4, %v1843_v18  ;;  %v2031_v11 = vpop.f32.mrf.mxu2 }
 0x1f9   : > { %v2083_v43 = vpop.f32.mrf.mxu3 }
 0x1fa   : > { %v1970_v28 = vadd.f32 %v1969_v23, %v1904_v15  ;;  %2443 = vmatmul.f32.gmra.mxu0 %v4669_v49  ;;  %2499 = vmatmul.f32.gmra.mxu1 %v4685_v31 }
 0x1fc   : > { %v2032_v63 = vadd.f32 %v2031_v11, %v1970_v28  ;;  %2603 = vmatmul.f32.gmra.mxu2 %v2602_v57 }
 0x1fe   : > { %v2084_v14 = vadd.f32 %v2083_v43, %v2032_v63  ;;  %2671 = vmatmul.f32.gmra.mxu3 %v4838_v16 }
 0x1ff   : > { %v1908_v27 = vpop.f32.mrf.mxu0  ;;  %v1981_v2 = vpop.f32.mrf.mxu1 }
 0x200   : > { %2926 = vst.msk [vmem:[%s4785_s24 + $0x28] sm:$0xff] %vm2920_vm14, %v2084_v14  ;;  %v1909_v49 = vadd.f32 %v1908_v27, %v1847_v61  ;;  %v2035_v40 = vpop.f32.mrf.mxu2 }
 0x201   : > { %v2087_v9 = vpop.f32.mrf.mxu3 }
 0x202   : > { %v1976_v21 = vadd.f32 %v1975_v52, %v1909_v49  ;;  %2447 = vmatmul.f32.gmra.mxu0 %v4685_v31  ;;  %2503 = vmatmul.f32.gmra.mxu1 %v4702_v38  ;;  %v5149_v31 = vld [vmem:[#allocation20_spill] sm:$0xff] }
 0x203   : > { %v5150_v35 = vand.u32 4294901760, %v5149_v31 }
 0x204   : > { %v2036_v0 = vadd.f32 %v2035_v40, %v1976_v21  ;;  %2611 = vmatmul.f32.gmra.mxu2 %v2610_v46 }
 0x206   : > { %v2088_v12 = vadd.f32 %v2087_v9, %v2036_v0  ;;  %2675 = vmatmul.f32.gmra.mxu3 %v4859_v29 }
 0x207   : > { %v1913_v34 = vpop.f32.mrf.mxu0  ;;  %v2235_v10 = vpop.f32.mrf.mxu1 }
 0x208   : > { %2927 = vst.msk [vmem:[%s4785_s24 + $0x30] sm:$0xff] %vm2920_vm14, %v2088_v12  ;;  %v1914_v23 = vadd.f32 %v1913_v34, %v1851_v5  ;;  %v2039_v50 = vpop.f32.mrf.mxu2 }
 0x209   : > { %v2091_v33 = vpop.f32.mrf.mxu3 }
 0x20a   : > { %v1982_v6 = vadd.f32 %v1981_v2, %v1914_v23  ;;  %2451 = vmatmul.f32.gmra.mxu0 %v4702_v38  ;;  %2764 = vmatmul.f32.vlgmr.msrb.gmra.mxu1 %v5150_v35  ;;  %v5151_v38 = vld [vmem:[#allocation21_spill] sm:$0xff] }
 0x20b   : > { %v5152_v48 = vand.u32 4294901760, %v5151_v38 }
 0x20c   : > { %v2040_v25 = vadd.f32 %v2039_v50, %v1982_v6  ;;  %2836 = vmatmul.f32.vlgmr.msrb.gmra.mxu2 %v4704_v32 }
 0x20e   : > { %v2092_v39 = vadd.f32 %v2091_v33, %v2040_v25  ;;  %2888 = vmatmul.f32.vlgmr.msrb.gmra.mxu3 %v4704_v32 }
 0x20f   : > { %v2143_v20 = vpop.f32.mrf.mxu0  ;;  %v2239_v30 = vpop.f32.mrf.mxu1 }
 0x210   : > { %2928 = vst.msk [vmem:[%s4785_s24 + $0x38] sm:$0xff] %vm2920_vm14, %v2092_v39  ;;  %v2236_v44 = vadd.f32 %v2235_v10, %v2143_v20  ;;  %v2291_v19 = vpop.f32.mrf.mxu2 }
 0x211   : > { %v2352_v36 = vpop.f32.mrf.mxu3 }
 0x212   : > { %v2292_v18 = vadd.f32 %v2291_v19, %v2236_v44  ;;  %2703 = vmatmul.f32.vlgmr.msrb.gmra.mxu0 %v5149_v31  ;;  %2770 = vmatmul.f32.gmra.mxu1 %v5152_v48 }
 0x214   : > { %v4909_v24 = vadd.f32 %v2352_v36, %v2292_v18  ;;  %2840 = vmatmul.f32.gmra.mxu2 %v4723_v13 }
 0x216   : > { %2892 = vmatmul.f32.gmra.mxu3 %v4723_v13 }
 0x217   : > { %v2151_v32 = vpop.f32.mrf.mxu0  ;;  %v2243_v4 = vpop.f32.mrf.mxu1 }
 0x218   : > { %v2240_v52 = vadd.f32 %v2239_v30, %v2151_v32  ;;  %v2296_v15 = vpop.f32.mrf.mxu2 }
 0x219   : > { %v2358_v11 = vpop.f32.mrf.mxu3 }
 0x21a   : > { %v2297_v57 = vadd.f32 %v2296_v15, %v2240_v52  ;;  %2708 = vmatmul.f32.gmra.mxu0 %v5151_v38  ;;  %2776 = vmatmul.f32.gmra.mxu1 %v2568_v7 }
 0x21c   : > { %v4916_v43 = vadd.f32 %v2358_v11, %v2297_v57  ;;  %2844 = vmatmul.f32.gmra.mxu2 %v4744_v41 }
 0x21e   : > { %2896 = vmatmul.f32.gmra.mxu3 %v4744_v41 }
 0x21f   : > { %v2159_v3 = vpop.f32.mrf.mxu0  ;;  %v2247_v37 = vpop.f32.mrf.mxu1 }
 0x220   : > { %v2244_v13 = vadd.f32 %v2243_v4, %v2159_v3  ;;  %v2301_v28 = vpop.f32.mrf.mxu2 }
 0x221   : > { %v2364_v63 = vpop.f32.mrf.mxu3 }
 0x222   : > { %v2302_v47 = vadd.f32 %v2301_v28, %v2244_v13  ;;  %2713 = vmatmul.f32.gmra.mxu0 %v4756_v53  ;;  %2782 = vmatmul.f32.gmra.mxu1 %v2576_v1 }
 0x224   : > { %v4923_v61 = vadd.f32 %v2364_v63, %v2302_v47  ;;  %2848 = vmatmul.f32.gmra.mxu2 %v4767_v60 }
 0x226   : > { %2900 = vmatmul.f32.gmra.mxu3 %v4767_v60 }
 0x227   : > { %v2167_v7 = vpop.f32.mrf.mxu0  ;;  %v2251_v51 = vpop.f32.mrf.mxu1 }
 0x228   : > { %v2248_v41 = vadd.f32 %v2247_v37, %v2167_v7  ;;  %v2306_v14 = vpop.f32.mrf.mxu2 }
 0x229   : > { %v2370_v27 = vpop.f32.mrf.mxu3 }
 0x22a   : > { %v2307_v2 = vadd.f32 %v2306_v14, %v2248_v41  ;;  %2718 = vmatmul.f32.gmra.mxu0 %v4777_v17  ;;  %2788 = vmatmul.f32.gmra.mxu1 %v2584_v42 }
 0x22c   : > { %v4930_v53 = vadd.f32 %v2370_v27, %v2307_v2  ;;  %2852 = vmatmul.f32.gmra.mxu2 %v4794_v45 }
 0x22e   : > { %2904 = vmatmul.f32.gmra.mxu3 %v4794_v45 }
 0x22f   : > { %v2175_v1 = vpop.f32.mrf.mxu0  ;;  %v2255_v49 = vpop.f32.mrf.mxu1 }
 0x230   : > { %v2252_v60 = vadd.f32 %v2251_v51, %v2175_v1  ;;  %v2311_v40 = vpop.f32.mrf.mxu2 }
 0x231   : > { %v2376_v46 = vpop.f32.mrf.mxu3 }
 0x232   : > { %v2312_v9 = vadd.f32 %v2311_v40, %v2252_v60  ;;  %2723 = vmatmul.f32.gmra.mxu0 %v4804_v59  ;;  %2794 = vmatmul.f32.gmra.mxu1 %v2592_v22 }
 0x234   : > { %v4937_v17 = vadd.f32 %v2376_v46, %v2312_v9  ;;  %2856 = vmatmul.f32.gmra.mxu2 %v4816_v26 }
 0x236   : > { %2908 = vmatmul.f32.gmra.mxu3 %v4816_v26 }
 0x237   : > { %v2183_v42 = vpop.f32.mrf.mxu0  ;;  %v2259_v54 = vpop.f32.mrf.mxu1 }
 0x238   : > { %v2256_v45 = vadd.f32 %v2255_v49, %v2183_v42  ;;  %v2316_v21 = vpop.f32.mrf.mxu2 }
 0x239   : > { %v2382_v0 = vpop.f32.mrf.mxu3 }
 0x23a   : > { %v2317_v5 = vadd.f32 %v2316_v21, %v2256_v45  ;;  %2728 = vmatmul.f32.gmra.mxu0 %v4826_v62  ;;  %2800 = vmatmul.f32.gmra.mxu1 %v2600_v8 }
 0x23c   : > { %v4944_v59 = vadd.f32 %v2382_v0, %v2317_v5  ;;  %2860 = vmatmul.f32.gmra.mxu2 %v4838_v16 }
 0x23e   : > { %2912 = vmatmul.f32.gmra.mxu3 %v4838_v16 }
 0x23f   : > { %v2191_v22 = vpop.f32.mrf.mxu0  ;;  %v2263_v12 = vpop.f32.mrf.mxu1 }
 0x240   : > { %v2260_v26 = vadd.f32 %v2259_v54, %v2191_v22  ;;  %v2321_v34 = vpop.f32.mrf.mxu2 }
 0x241   : > { %v2388_v10 = vpop.f32.mrf.mxu3 }
 0x242   : > { %v2322_v23 = vadd.f32 %v2321_v34, %v2260_v26  ;;  %2733 = vmatmul.f32.gmra.mxu0 %v4848_v58  ;;  %2806 = vmatmul.f32.gmra.mxu1 %v2608_v56 }
 0x244   : > { %v4951_v62 = vadd.f32 %v2388_v10, %v2322_v23  ;;  %2864 = vmatmul.f32.gmra.mxu2 %v4859_v29 }
 0x246   : > { %2916 = vmatmul.f32.gmra.mxu3 %v4859_v29 }
 0x247   : > { %v2199_v8 = vpop.f32.mrf.mxu0  ;;  %v2476_v50 = vpop.f32.mrf.mxu1 }
 0x248   : > { %v2264_v16 = vadd.f32 %v2263_v12, %v2199_v8  ;;  %v2326_v33 = vpop.f32.mrf.mxu2 }
 0x249   : > { %v2394_v6 = vpop.f32.mrf.mxu3 }
 0x24a   : > { %v2327_v31 = vadd.f32 %v2326_v33, %v2264_v16  ;;  %2738 = vmatmul.f32.gmra.mxu0 %v4868_v55 }
 0x24c   : > { %v4956_v35 = vadd.f32 %v2394_v6, %v2327_v31 }
 0x24f   : > { %v2424_v58 = vpop.f32.mrf.mxu0  ;;  %v2480_v25 = vpop.f32.mrf.mxu1 }
 0x250   : > { %v2556_v39 = vpop.f32.mrf.mxu2  ;;  %v2425_v41 = vadd.f32 %v2424_v58, %v4909_v24 }
 0x251   : > { %v2648_v56 = vpop.f32.mrf.mxu3 }
 0x252   : > { %v2477_v14 = vadd.f32 %v2476_v50, %v2425_v41 }
 0x254   : > { %v2557_v60 = vadd.f32 %v2556_v39, %v2477_v14 }
 0x256   : > { %v2649_v46 = vadd.f32 %v2648_v56, %v2557_v60 }
 0x257   : > { %v2428_v20 = vpop.f32.mrf.mxu0  ;;  %v2484_v30 = vpop.f32.mrf.mxu1 }
 0x258   : > { %v2564_v44 = vpop.f32.mrf.mxu2  ;;  %v2429_v40 = vadd.f32 %v2428_v20, %v4916_v43 }
 0x259   : > { %v2652_v19 = vpop.f32.mrf.mxu3 }
 0x25a   : > { %v2481_v9 = vadd.f32 %v2480_v25, %v2429_v40 }
 0x25c   : > { %v2565_v5 = vadd.f32 %v2564_v44, %v2481_v9 }
 0x25e   : > { %v2653_v26 = vadd.f32 %v2652_v19, %v2565_v5 }
 0x25f   : > { %v2432_v36 = vpop.f32.mrf.mxu0  ;;  %v2488_v29 = vpop.f32.mrf.mxu1 }
 0x260   : > { %v2572_v18 = vpop.f32.mrf.mxu2  ;;  %v2433_v24 = vadd.f32 %v2432_v36, %v4923_v61 }
 0x261   : > { %v2656_v38 = vpop.f32.mrf.mxu3 }
 0x262   : > { %v2485_v34 = vadd.f32 %v2484_v30, %v2433_v24 }
 0x264   : > { %v2573_v33 = vadd.f32 %v2572_v18, %v2485_v34 }
 0x266   : > { %v2657_v25 = vadd.f32 %v2656_v38, %v2573_v33 }
 0x267   : > { %v2436_v48 = vpop.f32.mrf.mxu0  ;;  %v2492_v32 = vpop.f32.mrf.mxu1 }
 0x268   : > { %v2580_v4 = vpop.f32.mrf.mxu2  ;;  %v2437_v6 = vadd.f32 %v2436_v48, %v4930_v53 }
 0x269   : > { %v2660_v52 = vpop.f32.mrf.mxu3 }
 0x26a   : > { %v2489_v61 = vadd.f32 %v2488_v29, %v2437_v6 }
 0x26c   : > { %v2581_v36 = vadd.f32 %v2580_v4, %v2489_v61 }
 0x26e   : > { %v2661_v18 = vadd.f32 %v2660_v52, %v2581_v36 }
 0x26f   : > { %v2440_v15 = vpop.f32.mrf.mxu0  ;;  %v4958_v55 = vpop.f32.mrf.mxu1 }
 0x270   : > { %v4960_v11 = vpop.f32.mrf.mxu2  ;;  %v2441_v41 = vadd.f32 %v2440_v15, %v4937_v17 }
 0x271   : > { %v4962_v57 = vpop.f32.mrf.mxu3 }
 0x272   : > { %v2493_v60 = vadd.f32 %v2492_v32, %v2441_v41 }
 0x277   : > { %v4964_v3 = vpop.f32.mrf.mxu0  ;;  %v4966_v37 = vpop.f32.mrf.mxu1 }
 0x278   : > { %v4968_v13 = vpop.f32.mrf.mxu2  ;;  %v2445_v9 = vadd.f32 %v4964_v3, %v4944_v59 }
 0x279   : > { %v4970_v28 = vpop.f32.mrf.mxu3 }
 0x27a   : > { %v2497_v52 = vadd.f32 %v4958_v55, %v2445_v9 }
 0x27c   : > { %v2597_v5 = vadd.f32 %v4968_v13, %v2497_v52 }
 0x27f   : > { %v4972_v63 = vpop.f32.mrf.mxu0  ;;  %v4974_v47 = vpop.f32.mrf.mxu1 }
 0x280   : > { %v4976_v7 = vpop.f32.mrf.mxu2 }
 0x281   : > { %v4978_v51 = vpop.f32.mrf.mxu3 }
 0x287   : > { %v4981_v27 = vpop.f32.mrf.mxu0  ;;  %v2765_v2 = vpop.f32.mrf.mxu1 }
 0x288   : > { %v4983_v1 = vpop.f32.mrf.mxu2  ;;  %v2453_v13 = vadd.f32 %v4981_v27, %v4956_v35 }
 0x289   : > { %v4985_v49 = vpop.f32.mrf.mxu3 }
 0x28f   : > { %v2704_v42 = vpop.f32.mrf.mxu0  ;;  %v2771_v54 = vpop.f32.mrf.mxu1 }
 0x290   : > { %v2705_v45 = vadd.f32 %v2704_v42, %v2649_v46  ;;  %v2837_v21 = vpop.f32.mrf.mxu2  ;;  %v2589_v46 = vadd.f32 %v4960_v11, %v2493_v60  ;;  %v2449_v11 = vadd.f32 %v4972_v63, %v4951_v62 }
 0x291   : > { %v2889_v0 = vpop.f32.mrf.mxu3 }
 0x292   : > { %v2766_v22 = vadd.f32 %v2765_v2, %v2705_v45  ;;  %v2665_v17 = vadd.f32 %v4962_v57, %v2589_v46  ;;  %v2501_v57 = vadd.f32 %v4966_v37, %v2449_v11 }
 0x294   : > { %v2838_v12 = vadd.f32 %v2837_v21, %v2766_v22  ;;  %v2669_v22 = vadd.f32 %v4970_v28, %v2597_v5  ;;  %v2505_v28 = vadd.f32 %v4974_v47, %v2453_v13 }
 0x296   : > { %v2890_v10 = vadd.f32 %v2889_v0, %v2838_v12  ;;  %v2613_v6 = vadd.f32 %v4983_v1, %v2505_v28 }
 0x297   : > { %v2709_v23 = vpop.f32.mrf.mxu0  ;;  %v2777_v8 = vpop.f32.mrf.mxu1 }
 0x298   : > { %v2710_v50 = vadd.f32 %v2709_v23, %v2653_v26  ;;  %v2841_v16 = vpop.f32.mrf.mxu2  ;;  %2937 = vrot.lane.b32.xlu2 %v2890_v10, %s3560_s18  ;;  %v2605_v23 = vadd.f32 %v4976_v7, %v2501_v57  ;;  %v2677_v35 = vadd.f32 %v4985_v49, %v2613_v6 }
 0x299   : > { %v2893_v43 = vpop.f32.mrf.mxu3 }
 0x29a   : > { %v2772_v31 = vadd.f32 %v2771_v54, %v2710_v50 }
 0x29c   : > { %v2842_v58 = vadd.f32 %v2841_v16, %v2772_v31 }
 0x29e   : > { %v2894_v39 = vadd.f32 %v2893_v43, %v2842_v58 }
 0x29f   : > { %v2714_v56 = vpop.f32.mrf.mxu0  ;;  %v2783_v44 = vpop.f32.mrf.mxu1 }
 0x2a0   : > { %v2715_v20 = vadd.f32 %v2714_v56, %v2657_v25  ;;  %v2845_v30 = vpop.f32.mrf.mxu2  ;;  %2939 = vrot.lane.b32.xlu0 %v2894_v39, %s3560_s18 }
 0x2a1   : > { %v2897_v19 = vpop.f32.mrf.mxu3 }
 0x2a2   : > { %v2778_v14 = vadd.f32 %v2777_v8, %v2715_v20  ;;  %v2673_v8 = vadd.f32 %v4978_v51, %v2605_v23 }
 0x2a4   : > { %v2846_v2 = vadd.f32 %v2845_v30, %v2778_v14 }
 0x2a6   : > { %v2898_v53 = vadd.f32 %v2897_v19, %v2846_v2 }
 0x2a7   : > { %v2719_v48 = vpop.f32.mrf.mxu0  ;;  %v2789_v4 = vpop.f32.mrf.mxu1 }
 0x2a8   : > { %v2720_v40 = vadd.f32 %v2719_v48, %v2661_v18  ;;  %v2849_v38 = vpop.f32.mrf.mxu2  ;;  %2941 = vrot.lane.b32.xlu1 %v2898_v53, %s3560_s18 }
 0x2a9   : > { %v2901_v29 = vpop.f32.mrf.mxu3 }
 0x2aa   : > { %v2784_v42 = vadd.f32 %v2783_v44, %v2720_v40 }
 0x2ac   : > { %v2850_v54 = vadd.f32 %v2849_v38, %v2784_v42 }
 0x2ae   : > { %v2902_v32 = vadd.f32 %v2901_v29, %v2850_v54 }
 0x2af   : > { %v2724_v15 = vpop.f32.mrf.mxu0  ;;  %v2795_v24 = vpop.f32.mrf.mxu1 }
 0x2b0   : > { %v2725_v45 = vadd.f32 %v2724_v15, %v2665_v17  ;;  %v2853_v21 = vpop.f32.mrf.mxu2  ;;  %2943 = vrot.lane.b32.xlu2 %v2902_v32, %s3560_s18 }
 0x2b1   : > { %v2905_v0 = vpop.f32.mrf.mxu3 }
 0x2b2   : > { %v2790_v59 = vadd.f32 %v2789_v4, %v2725_v45 }
 0x2b4   : > { %v2854_v3 = vadd.f32 %v2853_v21, %v2790_v59 }
 0x2b6   : > { %v2906_v55 = vadd.f32 %v2905_v0, %v2854_v3 }
 0x2b7   : > { %v2729_v12 = vpop.f32.mrf.mxu0  ;;  %v2801_v37 = vpop.f32.mrf.mxu1 }
 0x2b8   : > { %v2730_v26 = vadd.f32 %v2729_v12, %v2669_v22  ;;  %v2857_v34 = vpop.f32.mrf.mxu2  ;;  %2945 = vrot.lane.b32.xlu0 %v2906_v55, %s3560_s18 }
 0x2b9   : > { %v2909_v10 = vpop.f32.mrf.mxu3 }
 0x2ba   : > { %v2796_v62 = vadd.f32 %v2795_v24, %v2730_v26 }
 0x2bc   : > { %v2858_v63 = vadd.f32 %v2857_v34, %v2796_v62 }
 0x2be   : > { %v2910_v50 = vadd.f32 %v2909_v10, %v2858_v63 }
 0x2bf   : > { %v2734_v16 = vpop.f32.mrf.mxu0  ;;  %v2807_v25 = vpop.f32.mrf.mxu1 }
 0x2c0   : > { %v2735_v43 = vadd.f32 %v2734_v16, %v2673_v8  ;;  %2947 = vrot.lane.b32.xlu1 %v2910_v50, %s3560_s18  ;;  %v2861_v33 = vpop.f32.mrf.mxu2 }
 0x2c1   : > { %v2913_v7 = vpop.f32.mrf.mxu3 }
 0x2c2   : > { %v2802_v31 = vadd.f32 %v2801_v37, %v2735_v43 }
 0x2c4   : > { %v2862_v58 = vadd.f32 %v2861_v33, %v2802_v31 }
 0x2c6   : > { %v2914_v27 = vadd.f32 %v2913_v7, %v2862_v58 }
 0x2c7   : > { %v2739_v51 = vpop.f32.mrf.mxu0 }
 0x2c8   : > { %v2740_v47 = vadd.f32 %v2739_v51, %v2677_v35  ;;  %2949 = vrot.lane.b32.xlu2 %v2914_v27, %s3560_s18  ;;  %v2865_v39 = vpop.f32.mrf.mxu2 }
 0x2c9   : > { %v2917_v1 = vpop.f32.mrf.mxu3 }
 0x2ca   : > { %v2808_v61 = vadd.f32 %v2807_v25, %v2740_v47 }
 0x2cc   : > { %v2866_v56 = vadd.f32 %v2865_v39, %v2808_v61 }
 0x2ce   : > { %v2918_v20 = vadd.f32 %v2917_v1, %v2866_v56 }
 0x2d0   : > { %2951 = vrot.lane.b32.xlu0 %v2918_v20, %s3560_s18 }
 0x2f2   : > { %v2938_v49 = vpop.permute.xlu2 %2937 }
 0x2f3   : > { %2962 = vst.msk [vmem:[%s4785_s24] sm:$0xff] %vm2961_vm15, %v2938_v49 }
 0x30a   : > { %v2944_v30 = vpop.permute.xlu2 %2943 }
 0x30b   : > { %2965 = vst.msk [vmem:[%s4785_s24 + $0x18] sm:$0xff] %vm2961_vm15, %v2944_v30 }
 0x312   : > { %v2940_v44 = vpop.permute.xlu0 %2939 }
 0x313   : > { %2963 = vst.msk [vmem:[%s4785_s24 + $0x8] sm:$0xff] %vm2961_vm15, %v2940_v44 }
 0x31a   : > { %v2942_v19 = vpop.permute.xlu1 %2941 }
 0x31b   : > { %2964 = vst.msk [vmem:[%s4785_s24 + $0x10] sm:$0xff] %vm2961_vm15, %v2942_v19 }
 0x322   : > { %v2950_v36 = vpop.permute.xlu2 %2949 }
 0x323   : > { %2968 = vst.msk [vmem:[%s4785_s24 + $0x30] sm:$0xff] %vm2961_vm15, %v2950_v36 }
 0x32a   : > { %v2946_v41 = vpop.permute.xlu0 %2945 }
 0x32b   : > { %2966 = vst.msk [vmem:[%s4785_s24 + $0x20] sm:$0xff] %vm2961_vm15, %v2946_v41 }
 0x332   : > { %v2948_v14 = vpop.permute.xlu1 %2947 }
 0x333   : > { %2967 = vst.msk [vmem:[%s4785_s24 + $0x28] sm:$0xff] %vm2961_vm15, %v2948_v14 }
 0x342   : > { %v2952_v2 = vpop.permute.xlu0 %2951 }
 0x343   : > { %2969 = vst.msk [vmem:[%s4785_s24 + $0x38] sm:$0xff] %vm2961_vm15, %v2952_v2 }
 0x344 PF: > { %s26_s26 = sadd.s32 1, %s3553_s26   ;;  %s5153_s1 = sld [smem:[#allocation19_spill]] }
 0x345   : > { %p23_p2 = scmp.ge.s32.totalorder %s26_s26, 4   ;;  %s5154_s24 = sld [smem:[#allocation17_spill]] }
 0x346   : > { %s5155_s25 = sld [smem:[#allocation18_spill]]  ;;  %s5156_s21 = smov %s3537_s22 }
 0x347   : > { %s5157_s22 = smov %s3541_s23  ;;  %25 = sbr.rel (!%p23_p2) target bundleno = 12 (0xc), region = 129 }
 0x34a   : > { %s5158_s23 = smov %s5153_s1 }
 0x34c   :  { %3000 = vsyncpa [#allocation3], 1 }
 0x34d   :  { %3002 = vsyncpa [#allocation3 + $0x1], 1 }
 0x34e   :  { %3003 = vsyncpa [#allocation5], 1 }
 0x34f   :  { %3005 = vsyncpa [#allocation5 + $0x1], 1 }
 0x350   :  { %3006 = vsyncpa [#allocation8], 1 }
 0x351   :  { %3008 = vsyncpa [#allocation8 + $0x1], 1 }
 0x352   :  { %3009 = vsyncpa [#allocation11], 1 }

</bundles_post_ra>
